<compile_context>
chip_gen: v7x
topology: tpu7x:2x2x1
jax: 0.10.0
libtpu: 0.0.40
codegen_flags: <defaults>
</compile_context>

<pallas_src>
import jax
import jax.numpy as jnp
from jax.experimental import pallas as pl
from jax.experimental.pallas import tpu as pltpu


def _round_up(n, m):
    return ((n + m - 1) // m) * m


def _autoencoder_kernel(x_ref,
                        w1, b1, w2, b2, w3, b3, w45, b45,   # encoder + fused enc4/dec1
                        w6, b6, w7, b7, w8, b8,             # decoder
                        o_ref):
    def linear(h_bf16, w_ref, b_ref):
        # bf16 MXU matmul with f32 accumulation; f32 bias add on the VPU.
        return jnp.dot(h_bf16, w_ref[...],
                       preferred_element_type=jnp.float32) + b_ref[...]

    def relu_bf16(h_f32):
        # f32 ReLU on the VPU, then bf16 for the next MXU operand.
        return jnp.maximum(h_f32, 0.0).astype(jnp.bfloat16)

    h = x_ref[...]                        # bf16 straight from HBM

    h = relu_bf16(linear(h, w1, b1))      # img_size -> 128
    h = relu_bf16(linear(h, w2, b2))      # 128 -> 64
    h = relu_bf16(linear(h, w3, b3))      # 64 -> 12
    h = relu_bf16(linear(h, w45, b45))    # 12 -> 12   (enc L4 @ dec L1, exact fusion)
    h = relu_bf16(linear(h, w6, b6))      # 12 -> 64
    h = relu_bf16(linear(h, w7, b7))      # 64 -> 128
    h = linear(h, w8, b8)                 # 128 -> img_size   (f32)

    # sigmoid(h) = 1 / (1 + exp(-h)): exp on EUP, approx reciprocal on EUP slot.
    o_ref[...] = pl.reciprocal(1.0 + jnp.exp(-h), approx=True).astype(o_ref.dtype)


def prepare_params(params):
    """Fuse encoder layer 4 (12->lat) with decoder layer 1 (lat->12) — exact,
    since there is no nonlinearity between them — and pre-cast weights to bf16
    and biases to f32 once (not per call)."""
    (w1, b1), (w2, b2), (w3, b3), (w4, b4), (w5, b5), (w6, b6), (w7, b7), (w8, b8) = params
    w4f = w4.astype(jnp.float32)
    w5f = w5.astype(jnp.float32)
    w45 = jnp.dot(w4f, w5f)                                   # (12, 12), f32
    b45 = jnp.dot(b4.astype(jnp.float32), w5f) + b5.astype(jnp.float32)
    fused = [(w1, b1), (w2, b2), (w3, b3), (w45, b45), (w6, b6), (w7, b7), (w8, b8)]
    return [(w.astype(jnp.bfloat16), b.astype(jnp.float32)) for (w, b) in fused]


def autoencoder_forward(x, prepared, *, bm=1024, out_dtype=jnp.float32):
    """x: (B, img_size).  prepared: output of prepare_params (7 (W, b) pairs,
    W bf16 (in, out), b f32 (1, out))."""
    B, img_size = x.shape
    x = x.astype(jnp.bfloat16)   # halve input DMA; first matmul consumes bf16 anyway

    # Batch tile: multiple of 16 (bf16 sublane packing).  Big enough to amortize
    # per-grid-step overhead, but capped so the parallel batch axis has >=2 grid
    # steps whenever the batch allows (both v7x TensorCores get work).
    two_step_cap = _round_up(pl.cdiv(B, 2), 16)
    bm_eff = max(16, min(_round_up(bm, 16), two_step_cap, _round_up(B, 16)))
    grid = (pl.cdiv(B, bm_eff),)         # Pallas masks the partial trailing block

    flat = []
    in_specs = [pl.BlockSpec((bm_eff, img_size), lambda i: (i, 0))]
    param_bytes = 0
    for (w, b) in prepared:
        flat.append(w)
        flat.append(b)
        # Constant block index -> fetched once, VMEM-resident across the grid.
        in_specs.append(pl.BlockSpec(w.shape, lambda i: (0, 0)))
        in_specs.append(pl.BlockSpec(b.shape, lambda i: (0, 0)))
        param_bytes += w.size * w.dtype.itemsize + b.size * b.dtype.itemsize

    out_spec = pl.BlockSpec((bm_eff, img_size), lambda i: (i, 0))

    flops = 2 * B * sum(int(w.shape[0]) * int(w.shape[1]) for w, _ in prepared)
    bytes_accessed = (B * img_size * x.dtype.itemsize            # x (bf16)
                      + B * img_size * jnp.dtype(out_dtype).itemsize
                      + param_bytes)
    cost = pl.CostEstimate(flops=flops,
                           transcendentals=B * img_size,          # final sigmoid
                           bytes_accessed=bytes_accessed)

    return pl.pallas_call(
        _autoencoder_kernel,
        out_shape=jax.ShapeDtypeStruct((B, img_size), out_dtype),
        grid_spec=pltpu.PrefetchScalarGridSpec(
            num_scalar_prefetch=0,
            grid=grid,
            in_specs=in_specs,
            out_specs=out_spec,
        ),
        compiler_params=pltpu.CompilerParams(
            dimension_semantics=("parallel",)),
        cost_estimate=cost,
    )(x, *flat)


def init_params(key, lat_size, img_size):
    """Deterministic init mirroring the PyTorch layer shapes.
    Weights stored as (in_features, out_features); biases as (1, out_features)."""
    dims = [
        (img_size, 128), (128, 64), (64, 12), (12, lat_size),   # encoder
        (lat_size, 12), (12, 64), (64, 128), (128, img_size),   # decoder
    ]
    params = []
    for (fan_in, fan_out) in dims:
        key, kw, kb = jax.random.split(key, 3)
        bound = 1.0 / (fan_in ** 0.5)
        w = jax.random.uniform(kw, (fan_in, fan_out), jnp.float32, -bound, bound)
        b = jax.random.uniform(kb, (1, fan_out), jnp.float32, -bound, bound)
        params.append((w, b))
    return params


def autoencoder_ref(x, params):
    """Pure f32 reference matching the PyTorch module (8 unfused layers)."""
    h = x
    for idx, (w, b) in enumerate(params):
        h = jnp.dot(h, w) + b
        if idx == len(params) - 1:
            h = jax.nn.sigmoid(h)
        elif idx != 3:          # latent layer (index 3) has no activation
            h = jnp.maximum(h, 0.0)
    return h


def autoencoder_ref_fused_bf16(x, prepared):
    """Reference mirroring the kernel arithmetic: bf16 operands, f32 accumulate,
    fused layer 4/5, exact sigmoid."""
    h = x.astype(jnp.bfloat16)
    for idx, (w, b) in enumerate(prepared):
        h = jnp.dot(h, w, preferred_element_type=jnp.float32) + b
        if idx == len(prepared) - 1:
            h = jax.nn.sigmoid(h)
        else:
            h = jnp.maximum(h, 0.0).astype(jnp.bfloat16)
    return h


# TODO(synk): loss (MSE/CE) and optimizer (Adam/SGD) construction from __init__
# are training-time concerns, not part of the forward pass, and are not ported.

if __name__ == "__main__":
    lat_size = 8
    img_size = 256
    batch = 300   # deliberately not a multiple of the tile -> exercises the partial block

    key = jax.random.PRNGKey(0)
    key, kx = jax.random.split(key)
    x = jax.random.uniform(kx, (batch, img_size), jnp.float32)
    params = init_params(key, lat_size, img_size)
    prepared = prepare_params(params)

    out = autoencoder_forward(x, prepared, bm=1024)   # bm capped -> 2 grid steps
    out = jax.block_until_ready(out)

    ref_bf16 = autoencoder_ref_fused_bf16(x, prepared)
    ref_f32 = autoencoder_ref(x, params)

    assert out.shape == (batch, img_size)
    assert out.dtype == jnp.float32
    assert float(jnp.max(jnp.abs(out - ref_bf16))) < 5e-3, "mismatch vs bf16-matmul ref"
    assert float(jnp.max(jnp.abs(out - ref_f32))) < 5e-2, "mismatch vs f32 ref"

    # bf16-output path (halves output HBM traffic on this memory-bound kernel).
    out_bf16 = jax.block_until_ready(
        autoencoder_forward(x, prepared, bm=1024, out_dtype=jnp.bfloat16))
    assert out_bf16.dtype == jnp.bfloat16
    assert float(jnp.max(jnp.abs(out_bf16.astype(jnp.float32) - ref_f32))) < 6e-2

    print("KERNEL_OK")
</pallas_src>

<mosaic_0001>
module attributes {stable_mosaic.version = 11 : i64} {
  func.func @_autoencoder_kernel(%arg0: i32, %arg1: memref<160x256xbf16, #tpu.memory_space<vmem>>, %arg2: memref<256x128xbf16, #tpu.memory_space<vmem>>, %arg3: memref<1x128xf32, #tpu.memory_space<vmem>>, %arg4: memref<128x64xbf16, #tpu.memory_space<vmem>>, %arg5: memref<1x64xf32, #tpu.memory_space<vmem>>, %arg6: memref<64x12xbf16, #tpu.memory_space<vmem>>, %arg7: memref<1x12xf32, #tpu.memory_space<vmem>>, %arg8: memref<12x12xbf16, #tpu.memory_space<vmem>>, %arg9: memref<1x12xf32, #tpu.memory_space<vmem>>, %arg10: memref<12x64xbf16, #tpu.memory_space<vmem>>, %arg11: memref<1x64xf32, #tpu.memory_space<vmem>>, %arg12: memref<64x128xbf16, #tpu.memory_space<vmem>>, %arg13: memref<1x128xf32, #tpu.memory_space<vmem>>, %arg14: memref<128x256xbf16, #tpu.memory_space<vmem>>, %arg15: memref<1x256xf32, #tpu.memory_space<vmem>>, %arg16: memref<160x256xf32, #tpu.memory_space<vmem>>) attributes {dimension_semantics = [#tpu.dimension_semantics<parallel>], iteration_bounds = array<i64: 2>, scalar_prefetch = 0 : i64, scratch_operands = 0 : i64, tpu.core_type = #tpu.core_type<tc>, window_params = [{transform_indices = @transform_0, window_bounds = array<i64: 160, 256>}, {pipeline_mode = #tpu.pipeline_mode<synchronous>, transform_indices = @transform_1, window_bounds = array<i64: 256, 128>}, {pipeline_mode = #tpu.pipeline_mode<synchronous>, transform_indices = @transform_2, window_bounds = array<i64: 1, 128>}, {pipeline_mode = #tpu.pipeline_mode<synchronous>, transform_indices = @transform_3, window_bounds = array<i64: 128, 64>}, {pipeline_mode = #tpu.pipeline_mode<synchronous>, transform_indices = @transform_4, window_bounds = array<i64: 1, 64>}, {pipeline_mode = #tpu.pipeline_mode<synchronous>, transform_indices = @transform_5, window_bounds = array<i64: 64, 12>}, {pipeline_mode = #tpu.pipeline_mode<synchronous>, transform_indices = @transform_6, window_bounds = array<i64: 1, 12>}, {pipeline_mode = #tpu.pipeline_mode<synchronous>, transform_indices = @transform_7, window_bounds = array<i64: 12, 12>}, {pipeline_mode = #tpu.pipeline_mode<synchronous>, transform_indices = @transform_8, window_bounds = array<i64: 1, 12>}, {pipeline_mode = #tpu.pipeline_mode<synchronous>, transform_indices = @transform_9, window_bounds = array<i64: 12, 64>}, {pipeline_mode = #tpu.pipeline_mode<synchronous>, transform_indices = @transform_10, window_bounds = array<i64: 1, 64>}, {pipeline_mode = #tpu.pipeline_mode<synchronous>, transform_indices = @transform_11, window_bounds = array<i64: 64, 128>}, {pipeline_mode = #tpu.pipeline_mode<synchronous>, transform_indices = @transform_12, window_bounds = array<i64: 1, 128>}, {pipeline_mode = #tpu.pipeline_mode<synchronous>, transform_indices = @transform_13, window_bounds = array<i64: 128, 256>}, {pipeline_mode = #tpu.pipeline_mode<synchronous>, transform_indices = @transform_14, window_bounds = array<i64: 1, 256>}, {transform_indices = @transform_15, window_bounds = array<i64: 160, 256>}]} {
    %c0 = arith.constant 0 : index
    %c0_0 = arith.constant 0 : index
    %0 = vector.load %arg1[%c0, %c0_0] : memref<160x256xbf16, #tpu.memory_space<vmem>>, vector<160x256xbf16>
    %c0_1 = arith.constant 0 : index
    %c0_2 = arith.constant 0 : index
    %1 = vector.load %arg2[%c0_1, %c0_2] : memref<256x128xbf16, #tpu.memory_space<vmem>>, vector<256x128xbf16>
    %cst = arith.constant dense<0.000000e+00> : vector<160x128xf32>
    %2 = tpu.matmul %0, %1, %cst {dimension_numbers = #tpu.dot_dimension_numbers<[1], [0], [0], [1], [0, 0, 1, 1], [], []>} : vector<160x256xbf16>, vector<256x128xbf16>, vector<160x128xf32> -> vector<160x128xf32>
    %c0_3 = arith.constant 0 : index
    %c0_4 = arith.constant 0 : index
    %3 = vector.load %arg3[%c0_3, %c0_4] : memref<1x128xf32, #tpu.memory_space<vmem>>, vector<1x128xf32>
    %4 = vector.broadcast %3 : vector<1x128xf32> to vector<160x128xf32>
    %5 = arith.addf %2, %4 : vector<160x128xf32>
    %cst_5 = arith.constant 0.000000e+00 : f32
    %6 = vector.broadcast %cst_5 : f32 to vector<160x128xf32>
    %7 = arith.maximumf %5, %6 : vector<160x128xf32>
    %8 = arith.truncf %7 : vector<160x128xf32> to vector<160x128xbf16>
    %c0_6 = arith.constant 0 : index
    %c0_7 = arith.constant 0 : index
    %9 = vector.load %arg4[%c0_6, %c0_7] : memref<128x64xbf16, #tpu.memory_space<vmem>>, vector<128x64xbf16>
    %cst_8 = arith.constant dense<0.000000e+00> : vector<160x64xf32>
    %10 = tpu.matmul %8, %9, %cst_8 {dimension_numbers = #tpu.dot_dimension_numbers<[1], [0], [0], [1], [0, 0, 1, 1], [], []>} : vector<160x128xbf16>, vector<128x64xbf16>, vector<160x64xf32> -> vector<160x64xf32>
    %c0_9 = arith.constant 0 : index
    %c0_10 = arith.constant 0 : index
    %11 = vector.load %arg5[%c0_9, %c0_10] : memref<1x64xf32, #tpu.memory_space<vmem>>, vector<1x64xf32>
    %12 = vector.broadcast %11 : vector<1x64xf32> to vector<160x64xf32>
    %13 = arith.addf %10, %12 : vector<160x64xf32>
    %cst_11 = arith.constant 0.000000e+00 : f32
    %14 = vector.broadcast %cst_11 : f32 to vector<160x64xf32>
    %15 = arith.maximumf %13, %14 : vector<160x64xf32>
    %16 = arith.truncf %15 : vector<160x64xf32> to vector<160x64xbf16>
    %c0_12 = arith.constant 0 : index
    %c0_13 = arith.constant 0 : index
    %17 = vector.load %arg6[%c0_12, %c0_13] : memref<64x12xbf16, #tpu.memory_space<vmem>>, vector<64x12xbf16>
    %cst_14 = arith.constant dense<0.000000e+00> : vector<160x12xf32>
    %18 = tpu.matmul %16, %17, %cst_14 {dimension_numbers = #tpu.dot_dimension_numbers<[1], [0], [0], [1], [0, 0, 1, 1], [], []>} : vector<160x64xbf16>, vector<64x12xbf16>, vector<160x12xf32> -> vector<160x12xf32>
    %c0_15 = arith.constant 0 : index
    %c0_16 = arith.constant 0 : index
    %19 = vector.load %arg7[%c0_15, %c0_16] : memref<1x12xf32, #tpu.memory_space<vmem>>, vector<1x12xf32>
    %20 = vector.broadcast %19 : vector<1x12xf32> to vector<160x12xf32>
    %21 = arith.addf %18, %20 : vector<160x12xf32>
    %cst_17 = arith.constant 0.000000e+00 : f32
    %22 = vector.broadcast %cst_17 : f32 to vector<160x12xf32>
    %23 = arith.maximumf %21, %22 : vector<160x12xf32>
    %24 = arith.truncf %23 : vector<160x12xf32> to vector<160x12xbf16>
    %c0_18 = arith.constant 0 : index
    %c0_19 = arith.constant 0 : index
    %25 = vector.load %arg8[%c0_18, %c0_19] : memref<12x12xbf16, #tpu.memory_space<vmem>>, vector<12x12xbf16>
    %cst_20 = arith.constant dense<0.000000e+00> : vector<160x12xf32>
    %26 = tpu.matmul %24, %25, %cst_20 {dimension_numbers = #tpu.dot_dimension_numbers<[1], [0], [0], [1], [0, 0, 1, 1], [], []>} : vector<160x12xbf16>, vector<12x12xbf16>, vector<160x12xf32> -> vector<160x12xf32>
    %c0_21 = arith.constant 0 : index
    %c0_22 = arith.constant 0 : index
    %27 = vector.load %arg9[%c0_21, %c0_22] : memref<1x12xf32, #tpu.memory_space<vmem>>, vector<1x12xf32>
    %28 = vector.broadcast %27 : vector<1x12xf32> to vector<160x12xf32>
    %29 = arith.addf %26, %28 : vector<160x12xf32>
    %cst_23 = arith.constant 0.000000e+00 : f32
    %30 = vector.broadcast %cst_23 : f32 to vector<160x12xf32>
    %31 = arith.maximumf %29, %30 : vector<160x12xf32>
    %32 = arith.truncf %31 : vector<160x12xf32> to vector<160x12xbf16>
    %c0_24 = arith.constant 0 : index
    %c0_25 = arith.constant 0 : index
    %33 = vector.load %arg10[%c0_24, %c0_25] : memref<12x64xbf16, #tpu.memory_space<vmem>>, vector<12x64xbf16>
    %cst_26 = arith.constant dense<0.000000e+00> : vector<160x64xf32>
    %34 = tpu.matmul %32, %33, %cst_26 {dimension_numbers = #tpu.dot_dimension_numbers<[1], [0], [0], [1], [0, 0, 1, 1], [], []>} : vector<160x12xbf16>, vector<12x64xbf16>, vector<160x64xf32> -> vector<160x64xf32>
    %c0_27 = arith.constant 0 : index
    %c0_28 = arith.constant 0 : index
    %35 = vector.load %arg11[%c0_27, %c0_28] : memref<1x64xf32, #tpu.memory_space<vmem>>, vector<1x64xf32>
    %36 = vector.broadcast %35 : vector<1x64xf32> to vector<160x64xf32>
    %37 = arith.addf %34, %36 : vector<160x64xf32>
    %cst_29 = arith.constant 0.000000e+00 : f32
    %38 = vector.broadcast %cst_29 : f32 to vector<160x64xf32>
    %39 = arith.maximumf %37, %38 : vector<160x64xf32>
    %40 = arith.truncf %39 : vector<160x64xf32> to vector<160x64xbf16>
    %c0_30 = arith.constant 0 : index
    %c0_31 = arith.constant 0 : index
    %41 = vector.load %arg12[%c0_30, %c0_31] : memref<64x128xbf16, #tpu.memory_space<vmem>>, vector<64x128xbf16>
    %cst_32 = arith.constant dense<0.000000e+00> : vector<160x128xf32>
    %42 = tpu.matmul %40, %41, %cst_32 {dimension_numbers = #tpu.dot_dimension_numbers<[1], [0], [0], [1], [0, 0, 1, 1], [], []>} : vector<160x64xbf16>, vector<64x128xbf16>, vector<160x128xf32> -> vector<160x128xf32>
    %c0_33 = arith.constant 0 : index
    %c0_34 = arith.constant 0 : index
    %43 = vector.load %arg13[%c0_33, %c0_34] : memref<1x128xf32, #tpu.memory_space<vmem>>, vector<1x128xf32>
    %44 = vector.broadcast %43 : vector<1x128xf32> to vector<160x128xf32>
    %45 = arith.addf %42, %44 : vector<160x128xf32>
    %cst_35 = arith.constant 0.000000e+00 : f32
    %46 = vector.broadcast %cst_35 : f32 to vector<160x128xf32>
    %47 = arith.maximumf %45, %46 : vector<160x128xf32>
    %48 = arith.truncf %47 : vector<160x128xf32> to vector<160x128xbf16>
    %c0_36 = arith.constant 0 : index
    %c0_37 = arith.constant 0 : index
    %49 = vector.load %arg14[%c0_36, %c0_37] : memref<128x256xbf16, #tpu.memory_space<vmem>>, vector<128x256xbf16>
    %cst_38 = arith.constant dense<0.000000e+00> : vector<160x256xf32>
    %50 = tpu.matmul %48, %49, %cst_38 {dimension_numbers = #tpu.dot_dimension_numbers<[1], [0], [0], [1], [0, 0, 1, 1], [], []>} : vector<160x128xbf16>, vector<128x256xbf16>, vector<160x256xf32> -> vector<160x256xf32>
    %c0_39 = arith.constant 0 : index
    %c0_40 = arith.constant 0 : index
    %51 = vector.load %arg15[%c0_39, %c0_40] : memref<1x256xf32, #tpu.memory_space<vmem>>, vector<1x256xf32>
    %52 = vector.broadcast %51 : vector<1x256xf32> to vector<160x256xf32>
    %53 = arith.addf %50, %52 : vector<160x256xf32>
    %cst_41 = arith.constant 0.000000e+00 : f32
    %54 = vector.broadcast %cst_41 : f32 to vector<160x256xf32>
    %55 = arith.subf %54, %53 : vector<160x256xf32>
    %56 = math.exp %55 : vector<160x256xf32>
    %cst_42 = arith.constant 1.000000e+00 : f32
    %57 = vector.broadcast %cst_42 : f32 to vector<160x256xf32>
    %58 = arith.addf %57, %56 : vector<160x256xf32>
    %59 = tpu.reciprocal %58 {approx = true} : vector<160x256xf32> -> vector<160x256xf32>
    %c0_43 = arith.constant 0 : index
    %c0_44 = arith.constant 0 : index
    %60 = vector.load %arg16[%c0_43, %c0_44] : memref<160x256xf32, #tpu.memory_space<vmem>>, vector<160x256xf32>
    tpu.vector_store %arg16[%c0_43, %c0_44], %59 {strides = array<i32>} : memref<160x256xf32, #tpu.memory_space<vmem>>, vector<160x256xf32>,
    return
  }
  func.func @transform_0(%arg0: i32) -> (i32, i32) {
    %c0_i32 = arith.constant 0 : i32
    %c0_i32_0 = arith.constant 0 : i32
    return %arg0, %c0_i32 : i32, i32
  }
  func.func @transform_1(%arg0: i32) -> (i32, i32) {
    %c0_i32 = arith.constant 0 : i32
    %c0_i32_0 = arith.constant 0 : i32
    %c0_i32_1 = arith.constant 0 : i32
    return %c0_i32, %c0_i32_0 : i32, i32
  }
  func.func @transform_2(%arg0: i32) -> (i32, i32) {
    %c0_i32 = arith.constant 0 : i32
    %c0_i32_0 = arith.constant 0 : i32
    %c0_i32_1 = arith.constant 0 : i32
    return %c0_i32, %c0_i32_0 : i32, i32
  }
  func.func @transform_3(%arg0: i32) -> (i32, i32) {
    %c0_i32 = arith.constant 0 : i32
    %c0_i32_0 = arith.constant 0 : i32
    %c0_i32_1 = arith.constant 0 : i32
    return %c0_i32, %c0_i32_0 : i32, i32
  }
  func.func @transform_4(%arg0: i32) -> (i32, i32) {
    %c0_i32 = arith.constant 0 : i32
    %c0_i32_0 = arith.constant 0 : i32
    %c0_i32_1 = arith.constant 0 : i32
    return %c0_i32, %c0_i32_0 : i32, i32
  }
  func.func @transform_5(%arg0: i32) -> (i32, i32) {
    %c0_i32 = arith.constant 0 : i32
    %c0_i32_0 = arith.constant 0 : i32
    %c0_i32_1 = arith.constant 0 : i32
    return %c0_i32, %c0_i32_0 : i32, i32
  }
  func.func @transform_6(%arg0: i32) -> (i32, i32) {
    %c0_i32 = arith.constant 0 : i32
    %c0_i32_0 = arith.constant 0 : i32
    %c0_i32_1 = arith.constant 0 : i32
    return %c0_i32, %c0_i32_0 : i32, i32
  }
  func.func @transform_7(%arg0: i32) -> (i32, i32) {
    %c0_i32 = arith.constant 0 : i32
    %c0_i32_0 = arith.constant 0 : i32
    %c0_i32_1 = arith.constant 0 : i32
    return %c0_i32, %c0_i32_0 : i32, i32
  }
  func.func @transform_8(%arg0: i32) -> (i32, i32) {
    %c0_i32 = arith.constant 0 : i32
    %c0_i32_0 = arith.constant 0 : i32
    %c0_i32_1 = arith.constant 0 : i32
    return %c0_i32, %c0_i32_0 : i32, i32
  }
  func.func @transform_9(%arg0: i32) -> (i32, i32) {
    %c0_i32 = arith.constant 0 : i32
    %c0_i32_0 = arith.constant 0 : i32
    %c0_i32_1 = arith.constant 0 : i32
    return %c0_i32, %c0_i32_0 : i32, i32
  }
  func.func @transform_10(%arg0: i32) -> (i32, i32) {
    %c0_i32 = arith.constant 0 : i32
    %c0_i32_0 = arith.constant 0 : i32
    %c0_i32_1 = arith.constant 0 : i32
    return %c0_i32, %c0_i32_0 : i32, i32
  }
  func.func @transform_11(%arg0: i32) -> (i32, i32) {
    %c0_i32 = arith.constant 0 : i32
    %c0_i32_0 = arith.constant 0 : i32
    %c0_i32_1 = arith.constant 0 : i32
    return %c0_i32, %c0_i32_0 : i32, i32
  }
  func.func @transform_12(%arg0: i32) -> (i32, i32) {
    %c0_i32 = arith.constant 0 : i32
    %c0_i32_0 = arith.constant 0 : i32
    %c0_i32_1 = arith.constant 0 : i32
    return %c0_i32, %c0_i32_0 : i32, i32
  }
  func.func @transform_13(%arg0: i32) -> (i32, i32) {
    %c0_i32 = arith.constant 0 : i32
    %c0_i32_0 = arith.constant 0 : i32
    %c0_i32_1 = arith.constant 0 : i32
    return %c0_i32, %c0_i32_0 : i32, i32
  }
  func.func @transform_14(%arg0: i32) -> (i32, i32) {
    %c0_i32 = arith.constant 0 : i32
    %c0_i32_0 = arith.constant 0 : i32
    %c0_i32_1 = arith.constant 0 : i32
    return %c0_i32, %c0_i32_0 : i32, i32
  }
  func.func @transform_15(%arg0: i32) -> (i32, i32) {
    %c0_i32 = arith.constant 0 : i32
    %c0_i32_0 = arith.constant 0 : i32
    return %arg0, %c0_i32 : i32, i32
  }
}

</mosaic_0001>

<bundles_post_ra>
// kernel: tpu_custom_call.1
= control target key start
LH: loop header
LB: loop body
LE: loop exit
PB: predicated region body
PF: predicated region fallthrough
CT: control target
= control target key end

     0   :  { %s4591_s0 = inlined_call_operand.hbm [shape: bf16[300,256], index: 0, kind: input, shape index: {}]   ;;  %s4592_s1 = inlined_call_operand.vmem [shape: bf16[256,128], index: 1, kind: input, shape index: {}]   ;;  %s4593_s2 = inlined_call_operand.hbm [shape: f32[1,128], index: 2, kind: input, shape index: {}]   ;;  %s4594_s3 = inlined_call_operand.vmem [shape: bf16[128,64], index: 3, kind: input, shape index: {}]   ;;  %s4595_s4 = inlined_call_operand.hbm [shape: f32[1,64], index: 4, kind: input, shape index: {}]   ;;  %s4596_s5 = inlined_call_operand.vmem [shape: bf16[64,12], index: 5, kind: input, shape index: {}]   ;;  %s4597_s6 = inlined_call_operand.hbm [shape: f32[1,12], index: 6, kind: input, shape index: {}]   ;;  %s4598_s7 = inlined_call_operand.hbm [shape: bf16[12,12], index: 7, kind: input, shape index: {}]   ;;  %s4599_s8 = inlined_call_operand.hbm [shape: f32[1,12], index: 8, kind: input, shape index: {}]   ;;  %s4600_s9 = inlined_call_operand.vmem [shape: bf16[12,64], index: 9, kind: input, shape index: {}]   ;;  %s4601_s10 = inlined_call_operand.vmem [shape: f32[1,64], index: 10, kind: input, shape index: {}]   ;;  %s4602_s11 = inlined_call_operand.vmem [shape: bf16[64,128], index: 11, kind: input, shape index: {}]   ;;  %s4603_s12 = inlined_call_operand.vmem [shape: f32[1,128], index: 12, kind: input, shape index: {}]   ;;  %s4604_s13 = inlined_call_operand.hbm [shape: bf16[128,256], index: 13, kind: input, shape index: {}]   ;;  %s4605_s14 = inlined_call_operand.vmem [shape: f32[1,256], index: 14, kind: input, shape index: {}]   ;;  %s4606_s15 = inlined_call_operand.hbm [shape: f32[300,256], index: 15, kind: output, shape index: {}]  }
   0x1   :  { %4617 = sst [smem:[#allocation25_spill]] %s4593_s2 }
   0x2   :  { %4618 = sst [smem:[#allocation26_spill]] %s4595_s4 }
   0x3   :  { %4619 = sst [smem:[#allocation27_spill]] %s4600_s9 }
   0x4   :  { %4620 = sst [smem:[#allocation28_spill]] %s4601_s10 }
   0x5   :  { %4621 = sst [smem:[#allocation29_spill]] %s4602_s11 }
   0x6   :  { %4622 = sst [smem:[#allocation30_spill]] %s4603_s12 }
   0x7   :  { %4623 = sst [smem:[#allocation31_spill]] %s4605_s14 }
   0x8   :  { %4624 = sst [smem:[#allocation32_spill]] %s4606_s15 }
   0x9   :  { %20 = vsyncpa [#allocation3], 0 }
   0xa   :  { %22 = vsyncpa [#allocation3 + $0x1], 0 }
   0xb   :  { %23 = vsyncpa [#allocation6], 0 }
   0xc   :  { %24 = vsyncpa [#allocation9], 0 }
   0xd   :  { %25 = vsyncpa [#allocation12], 0 }
   0xe   :  { %26 = vsyncpa [#allocation4], 0 }
   0xf   :  { %28 = vsyncpa [#allocation4 + $0x1], 0  ;;  %s3852_s18 = smov 0   ;;  %s3854_s19 = smov 0  }
  0x10   :  { %s3856_s20 = smov 0   ;;  %s3858_s21 = smov 0  }
  0x11 LB: > { %4625 = sst [smem:[#allocation20_spill]] %s3741_s18  ;;  %s3873_s22 = sadd.s32 4294967295, %s3753_s21   ;;  %s3753_s21 = sphi %s3858_s21, %s4659_s21   ;;  %s3749_s20 = sphi %s3856_s20, %s4663_s20   ;;  %s3745_s19 = sphi %s3854_s19, %s4662_s19   ;;  %s3741_s18 = sphi %s3852_s18, %s4661_s18  }
  0x12   : > { %s2665_s23 = sadd.s32 4294967294, %s3753_s21   ;;  %s3877_s24 = sadd.s32 1, %s3753_s21  }
  0x13   : > { %4626 = sst [smem:[#allocation21_spill]] %s3877_s24  ;;  %s41_s25 = sadd.s32 1, %s3749_s20 }
  0x14   : > { %s38_s26 = ssub.s32 %s3753_s21, %s3877_s24  ;;  %p48_p0 = scmp.ne.s32.totalorder %s3749_s20, %s3745_s19 }
  0x15   : > { %p39_p1 = scmp.eq.s32.totalorder %s38_s26, 0  ;;  %p49_p2 = scmp.eq.s32.totalorder %s3753_s21, 0 }
  0x16   : > { %p54_p3 = scmp.ne.s32.totalorder %s3745_s19, %s3741_s18  ;;  %p4613_p4 = scmp.eq.s32.totalorder %s3873_s22, 0 }
  0x17   : > { %s3889_s27 = scalar_select %p39_p1, %s3749_s20, %s41_s25  }
  0x18   : > { %p3891_p5 = por %p49_p2, %p48_p0  ;;  %p3897_p6 = por %p4613_p4, %p54_p3 }
  0x19   : > { %4627 = sst [smem:[#allocation22_spill]] %s3889_s27  ;;  %p372_p7 = scmp.eq.s32.totalorder %s3873_s22, 1 }
  0x1a   : > { %s4628_s28 = scalar_select %p3891_p5, 1, 0 }
  0x1b   : > { %s4629_s29 = scalar_select %p3897_p6, 1, 0 }
  0x1c   : > { %p378_p8 = scmp.eq.s32.totalorder %s2665_s23, 1  ;;  %p2666_p9 = scmp.ge.s32.totalorder %s3753_s21, 1 }
  0x1d   : > { %p385_p10 = scmp.lt.s32.totalorder %s3753_s21, 3  ;;  %p3904_p11 = por %p372_p7, %p48_p0 }
  0x1e   : > { %p3908_p12 = por %p378_p8, %p54_p3  ;;  %s3755_s25 = smov [#allocation5]  }
  0x1f   : > { %s4630_s30 = scalar_select %p3904_p11, 1, 0 }
  0x20   : > { %s4632_s16 = scalar_select %p3908_p12, 1, 0 }
  0x21   : > { %4631 = sst [smem:[#allocation23_spill]] %s4630_s30  ;;  %p3912_p13 = pnand %p2666_p9, %p385_p10 }
  0x22   : > { %4633 = sst [smem:[#allocation24_spill]] %s4632_s16  ;;  %s401_s26 = sshll.u32 %s3755_s25, 4  ;;  %s402_s26 = int_to_ptr.vmem [resolvable:$true] %s401_s26 }
  0x23   : > { %s4634_s17 = scalar_select %p3912_p13, 1, 0 }
  0x24   : > { %p3148_p1 = pneg %p3912_p13  ;;  %s3756_s23 = smov [#allocation8]  }
  0x25   : > { %s429_s27 = sshll.u32 %s3756_s23, 4  ;;  %s3757_s16 = smov [#allocation11]   ;;  %s3924_s27 = int_to_ptr.vmem [resolvable:$true] %s429_s27 }
  0x26   : > { %p3920_p0 = pnand %p3148_p1, %p4613_p4  ;;  %s3926_s18 = sshll.u32 %s3757_s16, 4  ;;  %s454_s18 = int_to_ptr.vmem [resolvable:$true] %s3926_s18 }
  0x27   : > { %s4636_s2 = sld [smem:[#allocation25_spill]] }
  0x28   : > { %p3936_p3 = pneg %p3920_p0 }
  0x2d   : > { %s3479_s14 = scalar_lea.hbm %s4636_s2, 16 }
  0x2e   : > { %p3480_p2 = scmp.ne.s32.totalorder %s4636_s2, %s3479_s14  ;;  %p3486_p9 = scmp.lt.u32.totalorder %s3479_s14, %s4636_s2 }
  0x30   : > { %p3482_p7 = pnand %p3936_p3, %p3480_p2 }
  0x32   : > { %p3483_p8 = pneg %p3482_p7 }
  0x34   : > { %p3488_p10 = pnand %p3486_p9, %p3483_p8 }
  0x36   : > { %3491 = shalt.err (!%p3488_p10)
}
  0x37   : > { %s3492_s15 = scalar_lea.vmem %s402_s26, 16  ;;  %s3499_s12 = scalar_lea.vmem %s402_s26, 32 }
  0x38   : > { %p3493_p1 = scmp.ne.s32.totalorder %s402_s26, %s3492_s15  ;;  %p3500_p11 = scmp.lt.s32.totalorder %s402_s26, %s402_s26 }
  0x39   : > { %p3501_p6 = scmp.lt.s32.totalorder %s3499_s12, %s3492_s15 }
  0x3a   : > { %p3495_p4 = pnand %p3493_p1, %p3936_p3 }
  0x3b   : > { %p3502_p13 = por %p3501_p6, %p3500_p11 }
  0x3c   : > { %p3496_p12 = pneg %p3495_p4 }
  0x3e   : > { %p3503_p5 = pnand %p3502_p13, %p3496_p12 }
  0x40   : > { %3506 = shalt.err (!%p3503_p5)
}
  0x41   : > { %3151 = dma.hbm_to_vmem [thread:$0]  (!%p3920_p0), %s4636_s2, 16, %s402_s26, [#allocation6]  }
  0x42   : > { %s3507_s16 = scalar_lea.hbm %s4597_s6, 16 }
  0x43   : > { %p3508_p4 = scmp.ne.s32.totalorder %s4597_s6, %s3507_s16  ;;  %p3514_p5 = scmp.lt.u32.totalorder %s3507_s16, %s4597_s6 }
  0x45   : > { %p3510_p2 = pnand %p3508_p4, %p3936_p3 }
  0x47   : > { %p3511_p6 = pneg %p3510_p2 }
  0x49   : > { %p3516_p11 = pnand %p3514_p5, %p3511_p6 }
  0x4b   : > { %3519 = shalt.err (!%p3516_p11)
}
  0x4c   : > { %s3520_s26 = scalar_lea.vmem %s3924_s27, 16  ;;  %s3527_s9 = scalar_lea.vmem %s3924_s27, 32 }
  0x4d   : > { %p3521_p12 = scmp.ne.s32.totalorder %s3924_s27, %s3520_s26  ;;  %p3528_p8 = scmp.lt.s32.totalorder %s3924_s27, %s3924_s27 }
  0x4e   : > { %p3529_p9 = scmp.lt.s32.totalorder %s3527_s9, %s3520_s26 }
  0x4f   : > { %p3523_p13 = pnand %p3521_p12, %p3936_p3 }
  0x50   : > { %p3530_p10 = por %p3529_p9, %p3528_p8 }
  0x51   : > { %p3524_p7 = pneg %p3523_p13 }
  0x53   : > { %p3531_p1 = pnand %p3530_p10, %p3524_p7 }
  0x55   : > { %3534 = shalt.err (!%p3531_p1)
}
  0x56   : > { %3157 = dma.hbm_to_vmem [thread:$0]  (!%p3920_p0), %s4597_s6, 16, %s3924_s27, [#allocation9]  }
  0x57   : > { %s3758_s25 = smov [#allocation7]   ;;  %s3535_s15 = scalar_lea.hbm %s4599_s8, 16 }
  0x58   : > { %s415_s10 = sshll.u32 %s3758_s25, 4  ;;  %p3536_p4 = scmp.ne.s32.totalorder %s4599_s8, %s3535_s15  ;;  %s416_s10 = int_to_ptr.vmem [resolvable:$true] %s415_s10 }
  0x59   : > { %p3542_p5 = scmp.lt.u32.totalorder %s3535_s15, %s4599_s8 }
  0x5a   : > { %p3538_p2 = pnand %p3536_p4, %p3936_p3 }
  0x5c   : > { %p3539_p6 = pneg %p3538_p2 }
  0x5e   : > { %p3544_p11 = pnand %p3542_p5, %p3539_p6 }
  0x60   : > { %3547 = shalt.err (!%p3544_p11)
}
  0x61   : > { %s3548_s27 = scalar_lea.vmem %s454_s18, 16  ;;  %s3555_s11 = scalar_lea.vmem %s454_s18, 32 }
  0x62   : > { %p3549_p12 = scmp.ne.s32.totalorder %s454_s18, %s3548_s27  ;;  %p3556_p8 = scmp.lt.s32.totalorder %s454_s18, %s454_s18 }
  0x63   : > { %p3557_p9 = scmp.lt.s32.totalorder %s3555_s11, %s3548_s27 }
  0x64   : > { %p3551_p13 = pnand %p3549_p12, %p3936_p3 }
  0x65   : > { %p3558_p10 = por %p3557_p9, %p3556_p8 }
  0x66   : > { %p3552_p7 = pneg %p3551_p13 }
  0x68   : > { %p3559_p1 = pnand %p3558_p10, %p3552_p7 }
  0x6a   : > { %3562 = shalt.err (!%p3559_p1)
}
  0x6b   : > { %3163 = dma.hbm_to_vmem [thread:$0]  (!%p3920_p0), %s4599_s8, 16, %s454_s18, [#allocation12]  }
  0x6c   : > { %s4638_s4 = sld [smem:[#allocation26_spill]] }
  0x72   : > { %s3563_s16 = scalar_lea.hbm %s4638_s4, 16 }
  0x73   : > { %p3564_p4 = scmp.ne.s32.totalorder %s4638_s4, %s3563_s16  ;;  %p3570_p5 = scmp.lt.u32.totalorder %s3563_s16, %s4638_s4 }
  0x75   : > { %p3566_p2 = pnand %p3564_p4, %p3936_p3 }
  0x77   : > { %p3567_p6 = pneg %p3566_p2 }
  0x79   : > { %p3572_p11 = pnand %p3570_p5, %p3567_p6 }
  0x7b   : > { %3575 = shalt.err (!%p3572_p11)
}
  0x7c   : > { %s3576_s27 = scalar_lea.vmem %s416_s10, 16  ;;  %s3583_s18 = scalar_lea.vmem %s416_s10, 32 }
  0x7d   : > { %p3577_p12 = scmp.ne.s32.totalorder %s416_s10, %s3576_s27  ;;  %p3584_p8 = scmp.lt.s32.totalorder %s416_s10, %s416_s10 }
  0x7e   : > { %p3585_p9 = scmp.lt.s32.totalorder %s3583_s18, %s3576_s27 }
  0x7f   : > { %p3579_p13 = pnand %p3577_p12, %p3936_p3 }
  0x80   : > { %p3586_p10 = por %p3585_p9, %p3584_p8 }
  0x81   : > { %p3580_p7 = pneg %p3579_p13 }
  0x83   : > { %p3587_p1 = pnand %p3586_p10, %p3580_p7 }
  0x85   : > { %3590 = shalt.err (!%p3587_p1)
}
  0x86   : > { %3154 = dma.hbm_to_vmem [thread:$0]  (!%p3920_p0), %s4638_s4, 16, %s416_s10, [#allocation6]  }
  0x87   : > { %s3759_s25 = smov [#allocation10]   ;;  %s3591_s15 = scalar_lea.hbm %s4598_s7, 128 }
  0x88   : > { %s439_s2 = sshll.u32 %s3759_s25, 4  ;;  %p3592_p4 = scmp.ne.s32.totalorder %s4598_s7, %s3591_s15  ;;  %s440_s2 = int_to_ptr.vmem [resolvable:$true] %s439_s2 }
  0x89   : > { %p3598_p5 = scmp.lt.u32.totalorder %s3591_s15, %s4598_s7 }
  0x8a   : > { %p3594_p2 = pnand %p3592_p4, %p3936_p3 }
  0x8c   : > { %p3595_p6 = pneg %p3594_p2 }
  0x8e   : > { %p3600_p11 = pnand %p3598_p5, %p3595_p6 }
  0x90   : > { %3603 = shalt.err (!%p3600_p11)
}
  0x91   : > { %s3604_s10 = scalar_lea.vmem %s440_s2, 128  ;;  %p3612_p8 = scmp.lt.s32.totalorder %s440_s2, %s440_s2 }
  0x92   : > { %p3605_p12 = scmp.ne.s32.totalorder %s440_s2, %s3604_s10  ;;  %p3613_p9 = scmp.lt.s32.totalorder %s3604_s10, %s3604_s10 }
  0x94   : > { %p3607_p13 = pnand %p3605_p12, %p3936_p3  ;;  %p3614_p10 = por %p3613_p9, %p3612_p8 }
  0x96   : > { %p3608_p7 = pneg %p3607_p13 }
  0x98   : > { %p3615_p1 = pnand %p3614_p10, %p3608_p7 }
  0x9a   : > { %3618 = shalt.err (!%p3615_p1)
}
  0x9b   : > { %s3760_s18 = smov 64   ;;  %s3761_s11 = smov 4  }
  0x9c   : > { %3160 = dma.hbm_to_vmem [thread:$0]  (!%p3920_p0), %s4598_s7, 128, %s440_s2, [#allocation9], %s3760_s18, %s3760_s18, %s3761_s11  }
  0x9d   : > { %s3762_s14 = smov [#allocation13]   ;;  %s3619_s26 = scalar_lea.hbm %s4604_s13, 2048 }
  0x9e   : > { %s475_s16 = sshll.u32 %s3762_s14, 4  ;;  %p3620_p4 = scmp.ne.s32.totalorder %s4604_s13, %s3619_s26  ;;  %s476_s16 = int_to_ptr.vmem [resolvable:$true] %s475_s16 }
  0x9f   : > { %p3626_p5 = scmp.lt.u32.totalorder %s3619_s26, %s4604_s13 }
  0xa0   : > { %p3622_p2 = pnand %p3620_p4, %p3936_p3 }
  0xa2   : > { %p3623_p6 = pneg %p3622_p2 }
  0xa4   : > { %p3628_p11 = pnand %p3626_p5, %p3623_p6 }
  0xa6   : > { %3631 = shalt.err (!%p3628_p11)
}
  0xa7   : > { %s3632_s2 = scalar_lea.vmem %s476_s16, 2048  ;;  %p3640_p8 = scmp.lt.s32.totalorder %s476_s16, %s476_s16 }
  0xa8   : > { %p3633_p12 = scmp.ne.s32.totalorder %s476_s16, %s3632_s2  ;;  %p3641_p9 = scmp.lt.s32.totalorder %s3632_s2, %s3632_s2 }
  0xaa   : > { %p3635_p13 = pnand %p3633_p12, %p3936_p3  ;;  %p3642_p10 = por %p3641_p9, %p3640_p8 }
  0xac   : > { %p3636_p7 = pneg %p3635_p13 }
  0xae   : > { %p3643_p1 = pnand %p3642_p10, %p3636_p7 }
  0xb0   : > { %3646 = shalt.err (!%p3643_p1)
}
  0xb1   : > { %s3763_s18 = smov 128   ;;  %s3764_s11 = smov 8  }
  0xb2   : > { %3166 = dma.hbm_to_vmem [thread:$0]  (!%p3920_p0), %s4604_s13, 2048, %s476_s16, [#allocation12], %s3763_s18, %s3763_s18, %s3764_s11  }
  0xb3   : > { %p2673_p4 = scmp.ge.s32.totalorder %s3753_s21, 2 }
  0xb4   : > { %p4639_p3 = scmp.ne.s32.totalorder (!%p2673_p4), %s4628_s28, 0 }
  0xb5   : > { %488 = sbr.rel (%p2673_p4) target bundleno = 223 (0xdf), region = 72 }
  0xbc   : > { %491 = sbr.rel (!%p4639_p3) target bundleno = 223 (0xdf), region = 76  ;;  %s492_s23 = sand.u32 (%p4639_p3), 1, %s3749_s20  }
  0xbd   : > { %s497_s25 = smul.u32 (%p4639_p3), 20, %s3753_s21  ;;  %s4059_s12 = scalar_lea.sflag (%p4639_p3), [#allocation3], %s492_s23 }
  0xbe   : > { %s3119_s14 = smul.u32 (%p4639_p3), 160, %s492_s23 }
  0xbf   : > { %s498_s15 = ssub.s32 (%p4639_p3), 38, %s497_s25 }
  0xc0   : > { %p499_p2 = scmp.lt.s32.totalorder (%p4639_p3), %s498_s15, 20  ;;  %s496_s26 = scalar_lea.vmem (%p4639_p3), [#allocation2], %s3119_s14 }
  0xc3   : > { %s4665_s15 = smov (!%p499_p2, %s498_s15), 20 }
  0xc4   : > { %s4056_s24 = sshll.u32 %s4665_s15, 7 }
  0xc5   : > { %s504_s16 = ssub.s32 2560, %s4056_s24 }
  0xc6   : > { %505 = vsyncadd %s4059_s12, %s504_s16  ;;  %p2676_p0 = scmp.ne.s32.totalorder %s4056_s24, 0  ;;  %s2819_s28 = smul.u32 2560, %s3753_s21 }
  0xc7   : > { %s511_s9 = sshll.u32 %s496_s26, 4  ;;  %s3651_s4 = scalar_lea.hbm %s4591_s0, 4864  ;;  %s4069_s9 = int_to_ptr.vmem [resolvable:$true] %s511_s9 }
  0xc8   : > { %s4067_s2 = scalar_lea.hbm %s4591_s0, %s2819_s28 }
  0xc9   : > { %s3647_s18 = scalar_lea.hbm %s4067_s2, %s4056_s24  ;;  %p3652_p12 = scmp.lt.u32.totalorder %s4067_s2, %s4591_s0 }
  0xca   : > { %p3648_p6 = scmp.ne.s32.totalorder %s4067_s2, %s3647_s18  ;;  %p3653_p13 = scmp.lt.u32.totalorder %s3651_s4, %s3647_s18 }
  0xcb   : > { %p3655_p8 = scmp.lt.u32.totalorder %s3647_s18, %s4067_s2 }
  0xcc   : > { %p3649_p5 = pnand %p3648_p6, %p2676_p0  ;;  %p3654_p7 = por %p3653_p13, %p3652_p12 }
  0xce   : > { %p3650_p11 = pneg %p3649_p5  ;;  %p3656_p9 = por %p3655_p8, %p3654_p7 }
  0xd0   : > { %p3657_p10 = pnand %p3656_p9, %p3650_p11 }
  0xd2   : > { %3660 = shalt.err (!%p3657_p10)
}
  0xd3   : > { %s3661_s14 = scalar_lea.vmem %s4069_s9, %s4056_s24  ;;  %s3765_s15 = smov [#allocation2]  }
  0xd4   : > { %p3662_p1 = scmp.ne.s32.totalorder %s4069_s9, %s3661_s14  ;;  %s3665_s16 = sshll.u32 %s3765_s15, 4  ;;  %s3666_s16 = int_to_ptr.vmem [resolvable:$false] %s3665_s16 }
  0xd5   : > { %s3667_s26 = scalar_lea.vmem %s3666_s16, 5120  ;;  %p3668_p6 = scmp.lt.s32.totalorder %s4069_s9, %s3666_s16 }
  0xd6   : > { %p3663_p3 = pnand %p3662_p1, %p2676_p0  ;;  %p3669_p5 = scmp.lt.s32.totalorder %s3667_s26, %s3661_s14 }
  0xd8   : > { %p3664_p2 = pneg %p3663_p3  ;;  %p3670_p12 = por %p3669_p5, %p3668_p6 }
  0xda   : > { %p3671_p13 = pnand %p3670_p12, %p3664_p2 }
  0xdc   : > { %3674 = shalt.err (!%p3671_p13)
}
  0xdd   : > { %s3766_s28 = smov 128   ;;  %s3767_s27 = smov 8  }
  0xde   : > { %517 = dma.hbm_to_vmem [thread:$0]  (%p2676_p0), %s4067_s2, %s4056_s24, %s4069_s9, %s4059_s12, %s3766_s28, %s3766_s28, %s3767_s27  }
  0xdf PF: > { %p4640_p11 = scmp.ne.s32.totalorder %s4634_s17, 0 }
  0xe0   : > { %s4099_s10 = sand.u32 (!%p4640_p11), 1, %s3745_s19   ;;  %p4641_p7 = scmp.ne.s32.totalorder (!%p4640_p11), %s4629_s29, 0 }
  0xe1   : > { %523 = sbr.rel (%p4640_p11) target bundleno = 1966 (0x7ae), region = 80  ;;  %s526_s11 = scalar_lea.sflag (!%p4640_p11), [#allocation3], %s4099_s10 }
  0xe2   : > { %s3120_s18 = smul.u32 (!%p4640_p11), 160, %s4099_s10 }
  0xe4   : > { %s4103_s30 = scalar_lea.vmem (!%p4640_p11), [#allocation2], %s3120_s18 }
  0xe8   : > { %3720 = dma.done.wait (%p4641_p7), %s526_s11, 2560  }
  0xe9   : > { %3722 = vsyncadd (%p4641_p7), %s526_s11, 4294964736  ;;  %p4642_p0 = scmp.eq.s32.totalorder %s3873_s22, 0 }
  0xeb   : > { %3724 = dma.done.wait (%p4642_p0), [#allocation6], 32   ;;  %p4643_p8 = pmov %p4642_p0 }
  0xec   : > { %p4644_p9 = pmov %p4642_p0 }
  0xed   : > { %3726 = vsyncadd (%p4643_p8), [#allocation6], 4294967264 }
  0xee   : > { %3728 = dma.done.wait (%p4644_p9), [#allocation9], 144   ;;  %p4645_p10 = pmov %p4642_p0 }
  0xef   : > { %p4646_p1 = pmov %p4642_p0 }
  0xf0   : > { %3730 = vsyncadd (%p4645_p10), [#allocation9], 4294967152 }
  0xf1   : > { %3732 = dma.done.wait (%p4646_p1), [#allocation12], 2064   ;;  %p4647_p3 = pmov %p4642_p0 }
  0xf2   : > { %v3231_v0 = vld [vmem:[%s4592_s1 + $0x40] sm:$0xff]   ;;  %v3233_v2 = vld [vmem:[%s4592_s1 + $0x48] sm:$0xff]   ;;  %v3235_v4 = vld [vmem:[%s4592_s1 + $0x50] sm:$0xff]   ;;  %vm1483_vm0 = vcmask 1045504   ;;  %vm1264_vm1 = vcmask 523264   ;;  %s4648_s4 = sld [smem:[#allocation27_spill]] }
  0xf3   : > { %3734 = vsyncadd (%p4647_p3), [#allocation12], 4294965232  ;;  %v3232_v1 = vld [vmem:[%s4592_s1] sm:$0xff]   ;;  %2821 = vmatprep.subr.bf16.mxu0 %v3231_v0  ;;  %v3234_v3 = vld [vmem:[%s4592_s1 + $0x8] sm:$0xff]   ;;  %vm1452_vm2 = vcmask 97280   ;;  %s4649_s14 = sld [smem:[#allocation29_spill]] }
  0xf4   : > { %2822 = vmatpush3.bf16.msra.mxu0 %v3232_v1  ;;  %v3236_v5 = vld [vmem:[%s4592_s1 + $0x10] sm:$0xff]   ;;  %v3237_v6 = vld [vmem:[%s4592_s1 + $0x58] sm:$0xff]   ;;  %v3239_v8 = vld [vmem:[%s4592_s1 + $0x60] sm:$0xff]   ;;  %s4650_s29 = sld [smem:[#allocation28_spill]]  ;;  %s4651_s12 = sld [smem:[#allocation30_spill]] }
  0xf5   : > { %2823 = vmatprep.subr.bf16.mxu0 %v3233_v2  ;;  %v3238_v7 = vld [vmem:[%s4592_s1 + $0x18] sm:$0xff]   ;;  %v3240_v9 = vld [vmem:[%s4592_s1 + $0x20] sm:$0xff]   ;;  %v3241_v10 = vld [vmem:[%s4592_s1 + $0x68] sm:$0xff]   ;;  %s3121_s23 = smul.u32 320, %s4099_s10  ;;  %s2514_s15 = scalar_lea.sflag [#allocation4], %s4099_s10 }
  0xf6   : > { %v3249_v11 = vld [vmem:[%s4103_s30 + $0x4] ss:$8 sps:$4 sm:$0xff]   ;;  %v3243_v13 = vld [vmem:[%s4592_s1 + $0x70] sm:$0xff]   ;;  %v3245_v15 = vld [vmem:[%s4592_s1 + $0x78] sm:$0xff]   ;;  %s4653_s16 = sld [smem:[#allocation23_spill]] }
  0xf7   : > { %v3242_v12 = vld [vmem:[%s4592_s1 + $0x28] sm:$0xff]   ;;  %900 = vmatprep.mubr.bf16.mxu0 %v3249_v11  ;;  %v3244_v14 = vld [vmem:[%s4592_s1 + $0x30] sm:$0xff]   ;;  %v3246_v16 = vld [vmem:[%s4592_s1 + $0x38] sm:$0xff]   ;;  %s4462_s25 = scalar_lea.vmem [#allocation14], %s3121_s23 }
  0xf8   : > { %2824 = vmatpush3.bf16.msra.mxu0 %v3234_v3  ;;  %v3247_v17 = vld [vmem:[%s4103_s30] ss:$8 sps:$4 sm:$0xff]   ;;  %v3250_v19 = vld [vmem:[%s4103_s30 + $0x14] ss:$8 sps:$4 sm:$0xff]   ;;  %v3252_v21 = vld [vmem:[%s4103_s30 + $0x10] ss:$8 sps:$4 sm:$0xff]  }
  0xf9   : > { %2825 = vmatprep.subr.bf16.mxu0 %v3235_v4  ;;  %v3277_v18 = vld [vmem:[%s4594_s3] sm:$0xff]   ;;  %v3278_v20 = vld [vmem:[%s4594_s3 + $0x8] sm:$0xff]   ;;  %v3279_v22 = vld [vmem:[%s4594_s3 + $0x10] sm:$0xff]  }
  0xfa   : > { %3101 = vmatprep.subr.bf16.mxu1 %v3277_v18  ;;  %v3253_v23 = vld [vmem:[%s4103_s30 + $0x24] ss:$8 sps:$4 sm:$0xff]   ;;  %v3280_v24 = vld [vmem:[%s4594_s3 + $0x18] sm:$0xff]   ;;  %v3255_v26 = vld [vmem:[%s4103_s30 + $0x20] ss:$8 sps:$4 sm:$0xff]  }
  0xfb   : > { %3109 = vmatpush3.bf16.msra.mxu1 %v3277_v18  ;;  %v3281_v25 = vld [vmem:[%s4594_s3 + $0x20] sm:$0xff]   ;;  %v3256_v27 = vld [vmem:[%s4103_s30 + $0x34] ss:$8 sps:$4 sm:$0xff]   ;;  %v3282_v28 = vld [vmem:[%s4594_s3 + $0x28] sm:$0xff]  }
  0xfc   : > { %2826 = vmatpush3.bf16.msra.mxu0 %v3236_v5  ;;  %3102 = vmatprep.subr.bf16.mxu1 %v3278_v20  ;;  %v3283_v29 = vld [vmem:[%s4594_s3 + $0x30] sm:$0xff]   ;;  %v3259_v31 = vld [vmem:[%s4103_s30 + $0x44] ss:$8 sps:$4 sm:$0xff]   ;;  %v3261_v32 = vld [vmem:[%s4103_s30 + $0x40] ss:$8 sps:$4 sm:$0xff]   ;;  %p4654_p2 = scmp.ne.s32.totalorder %s4653_s16, 0 }
  0xfd   : > { %2827 = vmatprep.subr.bf16.mxu0 %v3237_v6  ;;  %v3258_v30 = vld [vmem:[%s4103_s30 + $0x30] ss:$8 sps:$4 sm:$0xff]   ;;  %v3262_v33 = vld [vmem:[%s4103_s30 + $0x54] ss:$8 sps:$4 sm:$0xff]   ;;  %v3265_v35 = vld [vmem:[%s4103_s30 + $0x64] ss:$8 sps:$4 sm:$0xff]  }
  0xfe   : > { %v3264_v34 = vld [vmem:[%s4103_s30 + $0x50] ss:$8 sps:$4 sm:$0xff]   ;;  %v3267_v36 = vld [vmem:[%s4103_s30 + $0x60] ss:$8 sps:$4 sm:$0xff]   ;;  %v3268_v37 = vld [vmem:[%s4103_s30 + $0x74] ss:$8 sps:$4 sm:$0xff]  }
  0xff   : > { %3110 = vmatpush3.bf16.msra.mxu1 %v3278_v20  ;;  %v3270_v38 = vld [vmem:[%s4103_s30 + $0x70] ss:$8 sps:$4 sm:$0xff]   ;;  %v3271_v39 = vld [vmem:[%s4103_s30 + $0x84] ss:$8 sps:$4 sm:$0xff]   ;;  %v3273_v40 = vld [vmem:[%s4103_s30 + $0x80] ss:$8 sps:$4 sm:$0xff]  }
 0x100   : > { %2828 = vmatpush3.bf16.msra.mxu0 %v3238_v7  ;;  %3103 = vmatprep.subr.bf16.mxu1 %v3279_v22  ;;  %v3274_v41 = vld [vmem:[%s4103_s30 + $0x94] ss:$8 sps:$4 sm:$0xff]   ;;  %v3276_v42 = vld [vmem:[%s4103_s30 + $0x90] ss:$8 sps:$4 sm:$0xff]   ;;  %v4216_v44 = vld [vmem:[%s4596_s5] sm:$0xff]   ;;  %s2521_s26 = smul.u32 (%p4654_p2), 20, %s3873_s22 }
 0x101   : > { %2829 = vmatprep.subr.bf16.mxu0 %v3239_v8  ;;  %v3284_v43 = vld [vmem:[%s4594_s3 + $0x38] sm:$0xff]   ;;  %v4219_v46 = vld [vmem:[#allocation5] ss:$0 sm:$0xff] }
 0x102   : > { %s2522_s28 = ssub.s32 (%p4654_p2), 38, %s2521_s26 }
 0x103   : > { %3111 = vmatpush3.bf16.msra.mxu1 %v3279_v22  ;;  %p2523_p6 = scmp.lt.s32.totalorder (%p4654_p2), %s2522_s28, 20 }
 0x104   : > { %2830 = vmatpush3.bf16.msra.mxu0 %v3240_v9  ;;  %3104 = vmatprep.subr.bf16.mxu1 %v3280_v24 }
 0x105   : > { %2831 = vmatprep.subr.bf16.mxu0 %v3241_v10 }
 0x107   : > { %3112 = vmatpush3.bf16.msra.mxu1 %v3280_v24 }
 0x108   : > { %2832 = vmatpush3.bf16.msra.mxu0 %v3242_v12  ;;  %3105 = vmatprep.subr.bf16.mxu1 %v3281_v25 }
 0x109   : > { %2833 = vmatprep.subr.bf16.mxu0 %v3243_v13 }
 0x10b   : > { %3113 = vmatpush3.bf16.msra.mxu1 %v3281_v25 }
 0x10c   : > { %2834 = vmatpush3.bf16.msra.mxu0 %v3244_v14  ;;  %3106 = vmatprep.subr.bf16.mxu1 %v3282_v28 }
 0x10d   : > { %2835 = vmatprep.subr.bf16.mxu0 %v3245_v15 }
 0x10f   : > { %3114 = vmatpush3.bf16.msra.mxu1 %v3282_v28 }
 0x110   : > { %2836 = vmatpush3.bf16.msra.mxu0 %v3246_v16  ;;  %3107 = vmatprep.subr.bf16.mxu1 %v3283_v29 }
 0x111   : > { %2965 = vmatprep.subr.bf16.mxu0 %v3277_v18 }
 0x113   : > { %901 = vmatmul.mubr.bf16.vlgmr.msra.gmra.mrb[0].mxu0 %v3247_v17  ;;  %3115 = vmatpush3.bf16.msra.mxu1 %v3283_v29 }
 0x114   : > { %908 = vmatprep.mubr.bf16.mxu0 %v3250_v19  ;;  %2966 = vmatpush3.bf16.msra.mxu0 %v3277_v18 }
 0x115   : > { %2967 = vmatprep.subr.bf16.mxu0 %v3278_v20  ;;  %3108 = vmatprep.subr.bf16.mxu1 %v3284_v43 }
 0x117   : > { %3116 = vmatpush3.bf16.msra.mxu1 %v3284_v43 }
 0x118   : > { %2968 = vmatpush3.bf16.msra.mxu0 %v3278_v20  ;;  %3001 = vmatprep.subr.bf16.mxu1 %v4216_v44 }
 0x119   : > { %2969 = vmatprep.subr.bf16.mxu0 %v3279_v22 }
 0x11b   : > { %909 = vmatmul.mubr.bf16.gmra.mrb[4].mxu0 %v3252_v21 }
 0x11c   : > { %916 = vmatprep.mubr.bf16.mxu0 %v3253_v23  ;;  %2970 = vmatpush3.bf16.msra.mxu0 %v3279_v22 }
 0x11d   : > { %2971 = vmatprep.subr.bf16.mxu0 %v3280_v24 }
 0x120   : > { %2972 = vmatpush3.bf16.msra.mxu0 %v3280_v24 }
 0x121   : > { %2973 = vmatprep.subr.bf16.mxu0 %v3281_v25 }
 0x123   : > { %917 = vmatmul.mubr.bf16.gmra.mrb[8].mxu0 %v3255_v26 }
 0x124   : > { %924 = vmatprep.mubr.bf16.mxu0 %v3256_v27  ;;  %2974 = vmatpush3.bf16.msra.mxu0 %v3281_v25 }
 0x125   : > { %2975 = vmatprep.subr.bf16.mxu0 %v3282_v28 }
 0x128   : > { %2976 = vmatpush3.bf16.msra.mxu0 %v3282_v28 }
 0x129   : > { %2977 = vmatprep.subr.bf16.mxu0 %v3283_v29 }
 0x12b   : > { %925 = vmatmul.mubr.bf16.gmra.mrb[12].mxu0 %v3258_v30 }
 0x12c   : > { %932 = vmatprep.mubr.bf16.mxu0 %v3259_v31  ;;  %2978 = vmatpush3.bf16.msra.mxu0 %v3283_v29 }
 0x12d   : > { %2979 = vmatprep.subr.bf16.mxu0 %v3284_v43 }
 0x130   : > { %2980 = vmatpush3.bf16.msra.mxu0 %v3284_v43 }
 0x133   : > { %933 = vmatmul.mubr.bf16.gmra.mrb[16].mxu0 %v3261_v32 }
 0x134   : > { %940 = vmatprep.mubr.bf16.mxu0 %v3262_v33 }
 0x13b   : > { %941 = vmatmul.mubr.bf16.gmra.mrb[20].mxu0 %v3264_v34 }
 0x13c   : > { %948 = vmatprep.mubr.bf16.mxu0 %v3265_v35 }
 0x143   : > { %949 = vmatmul.mubr.bf16.gmra.mrb[24].mxu0 %v3267_v36 }
 0x144   : > { %956 = vmatprep.mubr.bf16.mxu0 %v3268_v37 }
 0x14b   : > { %957 = vmatmul.mubr.bf16.gmra.mrb[28].mxu0 %v3270_v38 }
 0x14c   : > { %964 = vmatprep.mubr.bf16.mxu0 %v3271_v39 }
 0x153   : > { %965 = vmatmul.mubr.bf16.gmra.mrb[32].mxu0 %v3273_v40 }
 0x154   : > { %972 = vmatprep.mubr.bf16.mxu0 %v3274_v41 }
 0x15b   : > { %973 = vmatmul.mubr.bf16.gmra.mrb[36].mxu0 %v3276_v42 }
 0x1e6   : > { %v2837_v45 = vpop.f32.mrb[0].mxu0 }
 0x1e7   : > { %v2838_v47 = vpop.f32.mrb[1].mxu0 }
 0x1e8   : > { %v2839_v48 = vadd.f32 %v2838_v47, %v2837_v45  ;;  %v2840_v49 = vpop.f32.mrb[2].mxu0 }
 0x1e9   : > { %v2841_v50 = vpop.f32.mrb[3].mxu0 }
 0x1ea   : > { %v903_v51 = vadd.f32 %v2839_v48, %v4219_v46  ;;  %v2842_v52 = vadd.f32 %v2841_v50, %v2840_v49 }
 0x1ec   : > { %v906_v53 = vadd.f32 %v2842_v52, %v4219_v46  ;;  %v981_v54 = vmax.f32 %v903_v51, 0.0 }
 0x1ee   : > { %v982_v55 = vmax.f32 %v906_v53, 0.0  ;;  %v2843_v56 = vpop.f32.mrb[4].mxu0 }
 0x1ef   : > { %v2844_v57 = vpop.f32.mrb[5].mxu0 }
 0x1f0   : > { %v2845_v58 = vadd.f32 %v2844_v57, %v2843_v56  ;;  %v2846_v59 = vpop.f32.mrb[6].mxu0  ;;  %v1001_v60 = vpack.c.bf16 %v982_v55, %v981_v54 }
 0x1f1   : > { %v2847_v61 = vpop.f32.mrb[7].mxu0 }
 0x1f2   : > { %v911_v62 = vadd.f32 %v2845_v58, %v4219_v46  ;;  %v2848_v63 = vadd.f32 %v2847_v61, %v2846_v59  ;;  %2981 = vmatprep.mubr.bf16.mxu0 %v1001_v60 }
 0x1f4   : > { %v914_v0 = vadd.f32 %v2848_v63, %v4219_v46  ;;  %v983_v1 = vmax.f32 %v911_v62, 0.0 }
 0x1f6   : > { %v984_v2 = vmax.f32 %v914_v0, 0.0  ;;  %v2849_v3 = vpop.f32.mrb[8].mxu0 }
 0x1f7   : > { %v2850_v4 = vpop.f32.mrb[9].mxu0 }
 0x1f8   : > { %v1002_v5 = vpack.c.bf16 %v984_v2, %v983_v1  ;;  %v2851_v6 = vadd.f32 %v2850_v4, %v2849_v3  ;;  %v2852_v7 = vpop.f32.mrb[10].mxu0 }
 0x1f9   : > { %v2853_v8 = vpop.f32.mrb[11].mxu0 }
 0x1fa   : > { %v919_v9 = vadd.f32 %v2851_v6, %v4219_v46  ;;  %v2854_v10 = vadd.f32 %v2853_v8, %v2852_v7  ;;  %2982 = vmatmul.mubr.bf16.vlgmr.msra.gmra.mrb[40].mxu0 %v1002_v5 }
 0x1fc   : > { %v922_v11 = vadd.f32 %v2854_v10, %v4219_v46  ;;  %v985_v12 = vmax.f32 %v919_v9, 0.0 }
 0x1fe   : > { %v986_v13 = vmax.f32 %v922_v11, 0.0  ;;  %v2855_v14 = vpop.f32.mrb[12].mxu0 }
 0x1ff   : > { %v2856_v15 = vpop.f32.mrb[13].mxu0 }
 0x200   : > { %v2857_v16 = vadd.f32 %v2856_v15, %v2855_v14  ;;  %v2858_v17 = vpop.f32.mrb[14].mxu0  ;;  %v1003_v18 = vpack.c.bf16 %v986_v13, %v985_v12  ;;  %v3286_v12 = vld [vmem:[%s4596_s5 + $0x8] sm:$0xff]  }
 0x201   : > { %v2859_v19 = vpop.f32.mrb[15].mxu0 }
 0x202   : > { %v927_v20 = vadd.f32 %v2857_v16, %v4219_v46  ;;  %v2860_v21 = vadd.f32 %v2859_v19, %v2858_v17  ;;  %2985 = vmatprep.mubr.bf16.mxu0 %v1003_v18 }
 0x204   : > { %v930_v22 = vadd.f32 %v2860_v21, %v4219_v46  ;;  %v987_v23 = vmax.f32 %v927_v20, 0.0 }
 0x206   : > { %v988_v24 = vmax.f32 %v930_v22, 0.0  ;;  %v2861_v25 = vpop.f32.mrb[16].mxu0 }
 0x207   : > { %v2862_v26 = vpop.f32.mrb[17].mxu0 }
 0x208   : > { %v2863_v27 = vadd.f32 %v2862_v26, %v2861_v25  ;;  %v2864_v28 = vpop.f32.mrb[18].mxu0  ;;  %v1004_v29 = vpack.c.bf16 %v988_v24, %v987_v23 }
 0x209   : > { %v2865_v30 = vpop.f32.mrb[19].mxu0 }
 0x20a   : > { %v935_v31 = vadd.f32 %v2863_v27, %v4219_v46  ;;  %v2866_v32 = vadd.f32 %v2865_v30, %v2864_v28  ;;  %2986 = vmatmul.mubr.bf16.gmra.mrb[44].mxu0 %v1004_v29  ;;  %v3287_v30 = vld [vmem:[%s4596_s5 + $0x10] sm:$0xff]  }
 0x20c   : > { %v938_v33 = vadd.f32 %v2866_v32, %v4219_v46  ;;  %v989_v34 = vmax.f32 %v935_v31, 0.0  ;;  %v3288_v31 = vld [vmem:[%s4596_s5 + $0x18] sm:$0xff]   ;;  %v3289_v32 = vld [vmem:[#allocation10] sm:$0x3f]  }
 0x20d   : > { %3117 = vmatprep.subr.msk.bf16.mxu0 %vm1483_vm0, %v3289_v32 }
 0x20e   : > { %v990_v35 = vmax.f32 %v938_v33, 0.0  ;;  %v2867_v36 = vpop.f32.mrb[20].mxu0  ;;  %v4253_v33 = vld [vmem:[#allocation7] ss:$0 sm:$0xff] }
 0x20f   : > { %v2868_v37 = vpop.f32.mrb[21].mxu0 }
 0x210   : > { %v2869_v38 = vadd.f32 %v2868_v37, %v2867_v36  ;;  %v2870_v39 = vpop.f32.mrb[22].mxu0  ;;  %v1005_v40 = vpack.c.bf16 %v990_v35, %v989_v34 }
 0x211   : > { %v2871_v41 = vpop.f32.mrb[23].mxu0 }
 0x212   : > { %v943_v42 = vadd.f32 %v2869_v38, %v4219_v46  ;;  %v2872_v43 = vadd.f32 %v2871_v41, %v2870_v39  ;;  %2989 = vmatprep.mubr.bf16.mxu0 %v1005_v40 }
 0x214   : > { %v946_v45 = vadd.f32 %v2872_v43, %v4219_v46  ;;  %v991_v47 = vmax.f32 %v943_v42, 0.0 }
 0x216   : > { %v992_v48 = vmax.f32 %v946_v45, 0.0  ;;  %v2873_v49 = vpop.f32.mrb[24].mxu0 }
 0x217   : > { %v2874_v50 = vpop.f32.mrb[25].mxu0 }
 0x218   : > { %v2875_v51 = vadd.f32 %v2874_v50, %v2873_v49  ;;  %v2876_v52 = vpop.f32.mrb[26].mxu0  ;;  %v1006_v53 = vpack.c.bf16 %v992_v48, %v991_v47 }
 0x219   : > { %v2877_v54 = vpop.f32.mrb[27].mxu0 }
 0x21a   : > { %v2878_v55 = vadd.f32 %v2877_v54, %v2876_v52  ;;  %2990 = vmatmul.mubr.bf16.gmra.mrb[48].mxu0 %v1006_v53  ;;  %v951_v56 = vadd.f32 %v2875_v51, %v4219_v46 }
 0x21c   : > { %v954_v57 = vadd.f32 %v2878_v55, %v4219_v46  ;;  %v993_v59 = vmax.f32 %v951_v56, 0.0 }
 0x21e   : > { %v2879_v58 = vpop.f32.mrb[28].mxu0  ;;  %v994_v60 = vmax.f32 %v954_v57, 0.0 }
 0x21f   : > { %v2880_v61 = vpop.f32.mrb[29].mxu0 }
 0x220   : > { %v2881_v62 = vadd.f32 %v2880_v61, %v2879_v58  ;;  %v2882_v63 = vpop.f32.mrb[30].mxu0  ;;  %v1007_v0 = vpack.c.bf16 %v994_v60, %v993_v59 }
 0x221   : > { %v2883_v1 = vpop.f32.mrb[31].mxu0 }
 0x222   : > { %v959_v2 = vadd.f32 %v2881_v62, %v4219_v46  ;;  %v2884_v3 = vadd.f32 %v2883_v1, %v2882_v63  ;;  %2993 = vmatprep.mubr.bf16.mxu1 %v1007_v0 }
 0x224   : > { %v962_v4 = vadd.f32 %v2884_v3, %v4219_v46  ;;  %v995_v5 = vmax.f32 %v959_v2, 0.0 }
 0x226   : > { %v996_v6 = vmax.f32 %v962_v4, 0.0  ;;  %v2885_v7 = vpop.f32.mrb[32].mxu0 }
 0x227   : > { %v2886_v8 = vpop.f32.mrb[33].mxu0 }
 0x228   : > { %v2887_v9 = vadd.f32 %v2886_v8, %v2885_v7  ;;  %v2888_v10 = vpop.f32.mrb[34].mxu0  ;;  %v1008_v11 = vpack.c.bf16 %v996_v6, %v995_v5 }
 0x229   : > { %v2889_v13 = vpop.f32.mrb[35].mxu0 }
 0x22a   : > { %v967_v14 = vadd.f32 %v2887_v9, %v4219_v46  ;;  %v2890_v15 = vadd.f32 %v2889_v13, %v2888_v10  ;;  %2994 = vmatmul.mubr.bf16.vlgmr.msra.gmra.mrb[0].mxu1 %v1008_v11 }
 0x22b   : > { %3002 = vmatpush3.bf16.msra.mxu1 %v4216_v44 }
 0x22c   : > { %v970_v16 = vadd.f32 %v2890_v15, %v4219_v46  ;;  %3003 = vmatprep.subr.bf16.mxu1 %v3286_v12  ;;  %v997_v17 = vmax.f32 %v967_v14, 0.0 }
 0x22e   : > { %v998_v18 = vmax.f32 %v970_v16, 0.0  ;;  %v2891_v19 = vpop.f32.mrb[36].mxu0 }
 0x22f   : > { %v2892_v20 = vpop.f32.mrb[37].mxu0  ;;  %3004 = vmatpush3.bf16.msra.mxu1 %v3286_v12 }
 0x230   : > { %v2893_v21 = vadd.f32 %v2892_v20, %v2891_v19  ;;  %v2894_v22 = vpop.f32.mrb[38].mxu0  ;;  %v1009_v23 = vpack.c.bf16 %v998_v18, %v997_v17  ;;  %3005 = vmatprep.subr.bf16.mxu1 %v3287_v30 }
 0x231   : > { %v2895_v24 = vpop.f32.mrb[39].mxu0 }
 0x232   : > { %v975_v25 = vadd.f32 %v2893_v21, %v4219_v46  ;;  %v2896_v26 = vadd.f32 %v2895_v24, %v2894_v22  ;;  %2997 = vmatprep.mubr.bf16.mxu1 %v1009_v23 }
 0x233   : > { %3006 = vmatpush3.bf16.msra.mxu1 %v3287_v30 }
 0x234   : > { %v978_v27 = vadd.f32 %v2896_v26, %v4219_v46  ;;  %v999_v28 = vmax.f32 %v975_v25, 0.0  ;;  %3007 = vmatprep.subr.bf16.mxu1 %v3288_v31  ;;  %v1485_v46 = vsel %vm1483_vm0, %v3289_v32, 0 }
 0x235   : > { %3030 = vmatpush3.bf16.msra.mxu0 %v1485_v46 }
 0x236   : > { %v1000_v44 = vmax.f32 %v978_v27, 0.0 }
 0x237   : > { %3008 = vmatpush3.bf16.msra.mxu1 %v3288_v31 }
 0x238   : > { %v1010_v29 = vpack.c.bf16 %v1000_v44, %v999_v28 }
 0x23a   : > { %2998 = vmatmul.mubr.bf16.gmra.mrb[4].mxu1 %v1010_v29 }
 0x2cd   : > { %v2983_v34 = vpop.f32.mrb[40].mxu0 }
 0x2ce   : > { %v1125_v35 = vadd.f32 %v2983_v34, %v4253_v33  ;;  %v1116_v36 = vpop.f32.mrb[41].mxu0 }
 0x2cf   : > { %v1117_v37 = vadd.f32 %v4253_v33, %v1116_v36  ;;  %v2984_v38 = vpop.f32.mrb[42].mxu0 }
 0x2d0   : > { %v1128_v39 = vadd.f32 %v2984_v38, %v4253_v33  ;;  %v1119_v40 = vpop.f32.mrb[43].mxu0  ;;  %v1197_v42 = vmax.f32 %v1125_v35, 0.0 }
 0x2d1   : > { %v1120_v41 = vadd.f32 %v4253_v33, %v1119_v40  ;;  %v1195_v45 = vmax.f32 %v1117_v37, 0.0 }
 0x2d2   : > { %v1198_v43 = vmax.f32 %v1128_v39, 0.0 }
 0x2d3   : > { %v1196_v47 = vmax.f32 %v1120_v41, 0.0  ;;  %v3290_v41 = vld [vmem:[%s4648_s4] sm:$0x3f]   ;;  %s4652_s4 = sld [smem:[#allocation31_spill]] }
 0x2d4   : > { %v1216_v48 = vpack.c.bf16 %v1198_v43, %v1197_v42  ;;  %3118 = vmatprep.subr.msk.bf16.mxu1 %vm1483_vm0, %v3290_v41  ;;  %v1675_v42 = vsel %vm1483_vm0, %v3290_v41, 0 }
 0x2d5   : > { %v1215_v49 = vpack.c.bf16 %v1196_v47, %v1195_v45 }
 0x2d7   : > { %3009 = vmatprep.mubr.msk.bf16.mxu1 %vm1264_vm1, %v1215_v49 }
 0x2d8   : > { %3010 = vmatmul.mubr.msk.bf16.vlgmr.msra.gmra.mrb[8].mxu1 %vm1264_vm1, %v1216_v48 }
 0x2d9   : > { %3052 = vmatpush3.bf16.msra.mxu1 %v1675_v42 }
 0x2dd   : > { %v2987_v50 = vpop.f32.mrb[44].mxu0 }
 0x2de   : > { %v1141_v51 = vadd.f32 %v2987_v50, %v4253_v33  ;;  %v1132_v52 = vpop.f32.mrb[45].mxu0 }
 0x2df   : > { %v1133_v53 = vadd.f32 %v4253_v33, %v1132_v52  ;;  %v2988_v54 = vpop.f32.mrb[46].mxu0 }
 0x2e0   : > { %v1144_v55 = vadd.f32 %v2988_v54, %v4253_v33  ;;  %v1135_v56 = vpop.f32.mrb[47].mxu0  ;;  %v1201_v58 = vmax.f32 %v1141_v51, 0.0 }
 0x2e1   : > { %v1136_v57 = vadd.f32 %v4253_v33, %v1135_v56  ;;  %v1199_v60 = vmax.f32 %v1133_v53, 0.0 }
 0x2e2   : > { %v1202_v59 = vmax.f32 %v1144_v55, 0.0 }
 0x2e3   : > { %v1200_v61 = vmax.f32 %v1136_v57, 0.0 }
 0x2e4   : > { %v1218_v62 = vpack.c.bf16 %v1202_v59, %v1201_v58 }
 0x2e5   : > { %v1217_v63 = vpack.c.bf16 %v1200_v61, %v1199_v60 }
 0x2e7   : > { %3013 = vmatprep.mubr.msk.bf16.mxu1 %vm1264_vm1, %v1217_v63 }
 0x2e8   : > { %3014 = vmatmul.mubr.msk.bf16.gmra.mrb[12].mxu1 %vm1264_vm1, %v1218_v62 }
 0x2ed   : > { %v2991_v0 = vpop.f32.mrb[48].mxu0 }
 0x2ee   : > { %v1157_v1 = vadd.f32 %v2991_v0, %v4253_v33  ;;  %v1148_v2 = vpop.f32.mrb[49].mxu0 }
 0x2ef   : > { %v1149_v3 = vadd.f32 %v4253_v33, %v1148_v2  ;;  %v2992_v4 = vpop.f32.mrb[50].mxu0 }
 0x2f0   : > { %v1160_v5 = vadd.f32 %v2992_v4, %v4253_v33  ;;  %v1151_v6 = vpop.f32.mrb[51].mxu0  ;;  %v1205_v8 = vmax.f32 %v1157_v1, 0.0 }
 0x2f1   : > { %v1152_v7 = vadd.f32 %v4253_v33, %v1151_v6  ;;  %v1203_v10 = vmax.f32 %v1149_v3, 0.0 }
 0x2f2   : > { %v1206_v9 = vmax.f32 %v1160_v5, 0.0 }
 0x2f3   : > { %v1204_v11 = vmax.f32 %v1152_v7, 0.0 }
 0x2f4   : > { %v1220_v12 = vpack.c.bf16 %v1206_v9, %v1205_v8 }
 0x2f5   : > { %v1219_v13 = vpack.c.bf16 %v1204_v11, %v1203_v10 }
 0x2f7   : > { %3017 = vmatprep.mubr.msk.bf16.mxu1 %vm1264_vm1, %v1219_v13 }
 0x2f8   : > { %3018 = vmatmul.mubr.msk.bf16.gmra.mrb[16].mxu1 %vm1264_vm1, %v1220_v12 }
 0x2fd   : > { %v2995_v14 = vpop.f32.mrb[0].mxu1 }
 0x2fe   : > { %v1173_v15 = vadd.f32 %v2995_v14, %v4253_v33  ;;  %v1164_v16 = vpop.f32.mrb[1].mxu1 }
 0x2ff   : > { %v1165_v17 = vadd.f32 %v4253_v33, %v1164_v16  ;;  %v2996_v18 = vpop.f32.mrb[2].mxu1 }
 0x300   : > { %v1176_v19 = vadd.f32 %v2996_v18, %v4253_v33  ;;  %v1167_v20 = vpop.f32.mrb[3].mxu1  ;;  %v1209_v22 = vmax.f32 %v1173_v15, 0.0 }
 0x301   : > { %v1168_v21 = vadd.f32 %v4253_v33, %v1167_v20  ;;  %v1207_v24 = vmax.f32 %v1165_v17, 0.0 }
 0x302   : > { %v1210_v23 = vmax.f32 %v1176_v19, 0.0 }
 0x303   : > { %v1208_v25 = vmax.f32 %v1168_v21, 0.0 }
 0x304   : > { %v1222_v26 = vpack.c.bf16 %v1210_v23, %v1209_v22 }
 0x305   : > { %v1221_v27 = vpack.c.bf16 %v1208_v25, %v1207_v24 }
 0x307   : > { %3021 = vmatprep.mubr.msk.bf16.mxu1 %vm1264_vm1, %v1221_v27 }
 0x308   : > { %3022 = vmatmul.mubr.msk.bf16.gmra.mrb[20].mxu1 %vm1264_vm1, %v1222_v26 }
 0x30d   : > { %v2999_v28 = vpop.f32.mrb[4].mxu1 }
 0x30e   : > { %v1189_v44 = vadd.f32 %v2999_v28, %v4253_v33  ;;  %v1180_v29 = vpop.f32.mrb[5].mxu1 }
 0x30f   : > { %v1181_v30 = vadd.f32 %v4253_v33, %v1180_v29  ;;  %v3000_v31 = vpop.f32.mrb[6].mxu1 }
 0x310   : > { %v1192_v32 = vadd.f32 %v3000_v31, %v4253_v33  ;;  %v1183_v46 = vpop.f32.mrb[7].mxu1  ;;  %v1213_v35 = vmax.f32 %v1189_v44, 0.0 }
 0x311   : > { %v1184_v34 = vadd.f32 %v4253_v33, %v1183_v46  ;;  %v1211_v37 = vmax.f32 %v1181_v30, 0.0  ;;  %v4290_v33 = vld [vmem:[#allocation8] ss:$0 sm:$0xff] }
 0x312   : > { %v1214_v36 = vmax.f32 %v1192_v32, 0.0 }
 0x313   : > { %v1212_v38 = vmax.f32 %v1184_v34, 0.0 }
 0x314   : > { %v1224_v39 = vpack.c.bf16 %v1214_v36, %v1213_v35 }
 0x315   : > { %v1223_v40 = vpack.c.bf16 %v1212_v38, %v1211_v37 }
 0x317   : > { %3025 = vmatprep.mubr.msk.bf16.mxu1 %vm1264_vm1, %v1223_v40 }
 0x318   : > { %3026 = vmatmul.mubr.msk.bf16.gmra.mrb[24].mxu1 %vm1264_vm1, %v1224_v39 }
 0x3ab   : > { %v3011_v43 = vpop.f32.mrb[8].mxu1 }
 0x3ac   : > { %v1338_v45 = vadd.f32 %v3011_v43, %v4290_v33  ;;  %v1329_v47 = vpop.f32.mrb[9].mxu1 }
 0x3ad   : > { %v1330_v48 = vadd.f32 %v4290_v33, %v1329_v47  ;;  %v3012_v49 = vpop.f32.mrb[10].mxu1 }
 0x3ae   : > { %v1341_v50 = vadd.f32 %v3012_v49, %v4290_v33  ;;  %v1332_v51 = vpop.f32.mrb[11].mxu1  ;;  %v1410_v53 = vmax.f32 %v1338_v45, 0.0 }
 0x3af   : > { %v1333_v52 = vadd.f32 %v4290_v33, %v1332_v51  ;;  %v1408_v55 = vmax.f32 %v1330_v48, 0.0 }
 0x3b0   : > { %v1411_v54 = vmax.f32 %v1341_v50, 0.0 }
 0x3b1   : > { %v1409_v56 = vmax.f32 %v1333_v52, 0.0  ;;  %v3291_v52 = vld [vmem:[%s4649_s14] sm:$0xff]  }
 0x3b2   : > { %v1429_v57 = vpack.c.bf16 %v1411_v54, %v1410_v53  ;;  %v3292_v53 = vld [vmem:[%s4649_s14 + $0x8] sm:$0xff]   ;;  %3073 = vmatprep.subr.bf16.mxu0 %v3291_v52 }
 0x3b3   : > { %v1428_v58 = vpack.c.bf16 %v1409_v56, %v1408_v55  ;;  %v4331_v54 = vld [vmem:[#allocation11] ss:$0 sm:$0xff] }
 0x3b5   : > { %3031 = vmatprep.mubr.msk.bf16.mxu0 %vm1452_vm2, %v1428_v58 }
 0x3b6   : > { %3032 = vmatmul.mubr.msk.bf16.vlgmr.msra.gmra.mrb[52].mxu0 %vm1452_vm2, %v1429_v57 }
 0x3b7   : > { %3074 = vmatpush3.bf16.msra.mxu0 %v3291_v52 }
 0x3b8   : > { %3075 = vmatprep.subr.bf16.mxu0 %v3292_v53 }
 0x3bb   : > { %v3015_v59 = vpop.f32.mrb[12].mxu1  ;;  %3076 = vmatpush3.bf16.msra.mxu0 %v3292_v53 }
 0x3bc   : > { %v1354_v60 = vadd.f32 %v3015_v59, %v4290_v33  ;;  %v1345_v61 = vpop.f32.mrb[13].mxu1 }
 0x3bd   : > { %v1346_v62 = vadd.f32 %v4290_v33, %v1345_v61  ;;  %v3016_v63 = vpop.f32.mrb[14].mxu1 }
 0x3be   : > { %v1357_v0 = vadd.f32 %v3016_v63, %v4290_v33  ;;  %v1348_v1 = vpop.f32.mrb[15].mxu1  ;;  %v1414_v3 = vmax.f32 %v1354_v60, 0.0 }
 0x3bf   : > { %v1349_v2 = vadd.f32 %v4290_v33, %v1348_v1  ;;  %v1412_v5 = vmax.f32 %v1346_v62, 0.0 }
 0x3c0   : > { %v1415_v4 = vmax.f32 %v1357_v0, 0.0 }
 0x3c1   : > { %v1413_v6 = vmax.f32 %v1349_v2, 0.0 }
 0x3c2   : > { %v1431_v7 = vpack.c.bf16 %v1415_v4, %v1414_v3 }
 0x3c3   : > { %v1430_v8 = vpack.c.bf16 %v1413_v6, %v1412_v5 }
 0x3c5   : > { %3035 = vmatprep.mubr.msk.bf16.mxu0 %vm1452_vm2, %v1430_v8 }
 0x3c6   : > { %3036 = vmatmul.mubr.msk.bf16.gmra.mrb[56].mxu0 %vm1452_vm2, %v1431_v7 }
 0x3cb   : > { %v3019_v9 = vpop.f32.mrb[16].mxu1 }
 0x3cc   : > { %v1370_v10 = vadd.f32 %v3019_v9, %v4290_v33  ;;  %v1361_v11 = vpop.f32.mrb[17].mxu1 }
 0x3cd   : > { %v1362_v12 = vadd.f32 %v4290_v33, %v1361_v11  ;;  %v3020_v13 = vpop.f32.mrb[18].mxu1 }
 0x3ce   : > { %v1373_v14 = vadd.f32 %v3020_v13, %v4290_v33  ;;  %v1364_v15 = vpop.f32.mrb[19].mxu1  ;;  %v1418_v17 = vmax.f32 %v1370_v10, 0.0 }
 0x3cf   : > { %v1365_v16 = vadd.f32 %v4290_v33, %v1364_v15  ;;  %v1416_v19 = vmax.f32 %v1362_v12, 0.0 }
 0x3d0   : > { %v1419_v18 = vmax.f32 %v1373_v14, 0.0 }
 0x3d1   : > { %v1417_v20 = vmax.f32 %v1365_v16, 0.0 }
 0x3d2   : > { %v1433_v21 = vpack.c.bf16 %v1419_v18, %v1418_v17 }
 0x3d3   : > { %v1432_v22 = vpack.c.bf16 %v1417_v20, %v1416_v19 }
 0x3d5   : > { %3039 = vmatprep.mubr.msk.bf16.mxu0 %vm1452_vm2, %v1432_v22 }
 0x3d6   : > { %3040 = vmatmul.mubr.msk.bf16.gmra.mrb[60].mxu0 %vm1452_vm2, %v1433_v21 }
 0x3db   : > { %v3023_v23 = vpop.f32.mrb[20].mxu1 }
 0x3dc   : > { %v1386_v24 = vadd.f32 %v3023_v23, %v4290_v33  ;;  %v1377_v25 = vpop.f32.mrb[21].mxu1 }
 0x3dd   : > { %v1378_v26 = vadd.f32 %v4290_v33, %v1377_v25  ;;  %v3024_v27 = vpop.f32.mrb[22].mxu1 }
 0x3de   : > { %v1389_v28 = vadd.f32 %v3024_v27, %v4290_v33  ;;  %v1380_v44 = vpop.f32.mrb[23].mxu1  ;;  %v1422_v30 = vmax.f32 %v1386_v24, 0.0 }
 0x3df   : > { %v1381_v29 = vadd.f32 %v4290_v33, %v1380_v44  ;;  %v1420_v32 = vmax.f32 %v1378_v26, 0.0 }
 0x3e0   : > { %v1423_v31 = vmax.f32 %v1389_v28, 0.0 }
 0x3e1   : > { %v1421_v46 = vmax.f32 %v1381_v29, 0.0 }
 0x3e2   : > { %v1435_v34 = vpack.c.bf16 %v1423_v31, %v1422_v30 }
 0x3e3   : > { %v1434_v35 = vpack.c.bf16 %v1421_v46, %v1420_v32 }
 0x3e5   : > { %3043 = vmatprep.mubr.msk.bf16.mxu0 %vm1452_vm2, %v1434_v35 }
 0x3e6   : > { %3044 = vmatmul.mubr.msk.bf16.gmra.mrb[64].mxu0 %vm1452_vm2, %v1435_v34 }
 0x3eb   : > { %v3027_v36 = vpop.f32.mrb[24].mxu1 }
 0x3ec   : > { %v1402_v37 = vadd.f32 %v3027_v36, %v4290_v33  ;;  %v1393_v38 = vpop.f32.mrb[25].mxu1 }
 0x3ed   : > { %v1394_v39 = vadd.f32 %v4290_v33, %v1393_v38  ;;  %v3028_v40 = vpop.f32.mrb[26].mxu1 }
 0x3ee   : > { %v1405_v41 = vadd.f32 %v3028_v40, %v4290_v33  ;;  %v1396_v42 = vpop.f32.mrb[27].mxu1  ;;  %v1426_v45 = vmax.f32 %v1402_v37, 0.0 }
 0x3ef   : > { %v1397_v43 = vadd.f32 %v4290_v33, %v1396_v42  ;;  %v1424_v48 = vmax.f32 %v1394_v39, 0.0  ;;  %v3293_v33 = vld [vmem:[%s4649_s14 + $0x10] sm:$0xff]  }
 0x3f0   : > { %v1427_v47 = vmax.f32 %v1405_v41, 0.0  ;;  %3077 = vmatprep.subr.bf16.mxu0 %v3293_v33 }
 0x3f1   : > { %v1425_v49 = vmax.f32 %v1397_v43, 0.0  ;;  %3078 = vmatpush3.bf16.msra.mxu0 %v3293_v33 }
 0x3f2   : > { %v1437_v50 = vpack.c.bf16 %v1427_v47, %v1426_v45 }
 0x3f3   : > { %v1436_v51 = vpack.c.bf16 %v1425_v49, %v1424_v48 }
 0x3f5   : > { %3047 = vmatprep.mubr.msk.bf16.mxu0 %vm1452_vm2, %v1436_v51 }
 0x3f6   : > { %3048 = vmatmul.mubr.msk.bf16.gmra.mrb[68].mxu0 %vm1452_vm2, %v1437_v50 }
 0x489   : > { %v3033_v55 = vpop.f32.mrb[52].mxu0 }
 0x48a   : > { %v1530_v56 = vadd.f32 %v3033_v55, %v4331_v54  ;;  %v1521_v57 = vpop.f32.mrb[53].mxu0 }
 0x48b   : > { %v1522_v58 = vadd.f32 %v4331_v54, %v1521_v57  ;;  %v3034_v59 = vpop.f32.mrb[54].mxu0 }
 0x48c   : > { %v1533_v60 = vadd.f32 %v3034_v59, %v4331_v54  ;;  %v1524_v61 = vpop.f32.mrb[55].mxu0  ;;  %v1602_v63 = vmax.f32 %v1530_v56, 0.0 }
 0x48d   : > { %v1525_v62 = vadd.f32 %v4331_v54, %v1524_v61  ;;  %v1600_v1 = vmax.f32 %v1522_v58, 0.0 }
 0x48e   : > { %v1603_v0 = vmax.f32 %v1533_v60, 0.0 }
 0x48f   : > { %v1601_v2 = vmax.f32 %v1525_v62, 0.0  ;;  %v3294_v62 = vld [vmem:[%s4649_s14 + $0x18] sm:$0xff]  }
 0x490   : > { %v1621_v3 = vpack.c.bf16 %v1603_v0, %v1602_v63  ;;  %3079 = vmatprep.subr.bf16.mxu0 %v3294_v62  ;;  %v3295_v63 = vld [vmem:[#allocation13] ss:$8 sps:$4 sm:$0xff]   ;;  %v3297_v0 = vld [vmem:[#allocation13 + $0x4] ss:$8 sps:$4 sm:$0xff]  }
 0x491   : > { %v1620_v4 = vpack.c.bf16 %v1601_v2, %v1600_v1  ;;  %3080 = vmatpush3.bf16.msra.mxu0 %v3294_v62  ;;  %v3300_v1 = vld [vmem:[#allocation13 + $0x14] ss:$8 sps:$4 sm:$0xff]   ;;  %2140 = vmatprep.subr.bf16.mxu1 %v3297_v0  ;;  %v3303_v2 = vld [vmem:[#allocation13 + $0x24] ss:$8 sps:$4 sm:$0xff]  }
 0x493   : > { %3053 = vmatprep.mubr.msk.bf16.mxu1 %vm1452_vm2, %v1620_v4  ;;  %v3306_v4 = vld [vmem:[#allocation13 + $0x34] ss:$8 sps:$4 sm:$0xff]  }
 0x494   : > { %3054 = vmatmul.mubr.msk.bf16.vlgmr.msra.gmra.mrb[28].mxu1 %vm1452_vm2, %v1621_v3  ;;  %v3301_v3 = vld [vmem:[#allocation13 + $0x20] ss:$8 sps:$4 sm:$0xff]  }
 0x495   : > { %2141 = vmatpush1.bf16.msra.mxu1 %v3295_v63 }
 0x496   : > { %2142 = vmatprep.subr.bf16.mxu1 %v3300_v1 }
 0x499   : > { %v3037_v5 = vpop.f32.mrb[56].mxu0 }
 0x49a   : > { %v1546_v6 = vadd.f32 %v3037_v5, %v4331_v54  ;;  %v1537_v7 = vpop.f32.mrb[57].mxu0  ;;  %v3304_v5 = vld [vmem:[#allocation13 + $0x30] ss:$8 sps:$4 sm:$0xff]  }
 0x49b   : > { %v1538_v8 = vadd.f32 %v4331_v54, %v1537_v7  ;;  %v3038_v9 = vpop.f32.mrb[58].mxu0  ;;  %v3307_v7 = vld [vmem:[#allocation13 + $0x40] ss:$8 sps:$4 sm:$0xff]  }
 0x49c   : > { %v1549_v10 = vadd.f32 %v3038_v9, %v4331_v54  ;;  %v1540_v11 = vpop.f32.mrb[59].mxu0  ;;  %v1606_v13 = vmax.f32 %v1546_v6, 0.0  ;;  %v3309_v6 = vld [vmem:[#allocation13 + $0x44] ss:$8 sps:$4 sm:$0xff]   ;;  %v3310_v9 = vld [vmem:[#allocation13 + $0x50] ss:$8 sps:$4 sm:$0xff]  }
 0x49d   : > { %v1541_v12 = vadd.f32 %v4331_v54, %v1540_v11  ;;  %v1604_v15 = vmax.f32 %v1538_v8, 0.0  ;;  %v3312_v8 = vld [vmem:[#allocation13 + $0x54] ss:$8 sps:$4 sm:$0xff]   ;;  %v3313_v11 = vld [vmem:[#allocation13 + $0x60] ss:$8 sps:$4 sm:$0xff]  }
 0x49e   : > { %v1607_v14 = vmax.f32 %v1549_v10, 0.0  ;;  %v3315_v10 = vld [vmem:[#allocation13 + $0x64] ss:$8 sps:$4 sm:$0xff]  }
 0x49f   : > { %v1605_v16 = vmax.f32 %v1541_v12, 0.0  ;;  %v4369_v12 = vld [vmem:[%s4650_s29] ss:$0 sm:$0xff] }
 0x4a0   : > { %v1623_v17 = vpack.c.bf16 %v1607_v14, %v1606_v13 }
 0x4a1   : > { %v1622_v18 = vpack.c.bf16 %v1605_v16, %v1604_v15 }
 0x4a3   : > { %3057 = vmatprep.mubr.msk.bf16.mxu1 %vm1452_vm2, %v1622_v18 }
 0x4a4   : > { %3058 = vmatmul.mubr.msk.bf16.gmra.mrb[32].mxu1 %vm1452_vm2, %v1623_v17 }
 0x4a9   : > { %v3041_v19 = vpop.f32.mrb[60].mxu0 }
 0x4aa   : > { %v1562_v20 = vadd.f32 %v3041_v19, %v4331_v54  ;;  %v1553_v21 = vpop.f32.mrb[61].mxu0 }
 0x4ab   : > { %v1554_v22 = vadd.f32 %v4331_v54, %v1553_v21  ;;  %v3042_v23 = vpop.f32.mrb[62].mxu0 }
 0x4ac   : > { %v1565_v24 = vadd.f32 %v3042_v23, %v4331_v54  ;;  %v1556_v25 = vpop.f32.mrb[63].mxu0  ;;  %v1610_v27 = vmax.f32 %v1562_v20, 0.0 }
 0x4ad   : > { %v1557_v26 = vadd.f32 %v4331_v54, %v1556_v25  ;;  %v1608_v44 = vmax.f32 %v1554_v22, 0.0 }
 0x4ae   : > { %v1611_v28 = vmax.f32 %v1565_v24, 0.0 }
 0x4af   : > { %v1609_v29 = vmax.f32 %v1557_v26, 0.0 }
 0x4b0   : > { %v1625_v30 = vpack.c.bf16 %v1611_v28, %v1610_v27 }
 0x4b1   : > { %v1624_v31 = vpack.c.bf16 %v1609_v29, %v1608_v44 }
 0x4b3   : > { %3061 = vmatprep.mubr.msk.bf16.mxu1 %vm1452_vm2, %v1624_v31 }
 0x4b4   : > { %3062 = vmatmul.mubr.msk.bf16.gmra.mrb[36].mxu1 %vm1452_vm2, %v1625_v30 }
 0x4b9   : > { %v3045_v32 = vpop.f32.mrb[64].mxu0 }
 0x4ba   : > { %v1578_v46 = vadd.f32 %v3045_v32, %v4331_v54  ;;  %v1569_v34 = vpop.f32.mrb[65].mxu0 }
 0x4bb   : > { %v1570_v35 = vadd.f32 %v4331_v54, %v1569_v34  ;;  %v3046_v36 = vpop.f32.mrb[66].mxu0 }
 0x4bc   : > { %v1581_v37 = vadd.f32 %v3046_v36, %v4331_v54  ;;  %v1572_v38 = vpop.f32.mrb[67].mxu0  ;;  %v1614_v40 = vmax.f32 %v1578_v46, 0.0 }
 0x4bd   : > { %v1573_v39 = vadd.f32 %v4331_v54, %v1572_v38  ;;  %v1612_v42 = vmax.f32 %v1570_v35, 0.0 }
 0x4be   : > { %v1615_v41 = vmax.f32 %v1581_v37, 0.0 }
 0x4bf   : > { %v1613_v43 = vmax.f32 %v1573_v39, 0.0 }
 0x4c0   : > { %v1627_v45 = vpack.c.bf16 %v1615_v41, %v1614_v40 }
 0x4c1   : > { %v1626_v47 = vpack.c.bf16 %v1613_v43, %v1612_v42 }
 0x4c3   : > { %3065 = vmatprep.mubr.msk.bf16.mxu1 %vm1452_vm2, %v1626_v47 }
 0x4c4   : > { %3066 = vmatmul.mubr.msk.bf16.gmra.mrb[40].mxu1 %vm1452_vm2, %v1627_v45 }
 0x4c9   : > { %v3049_v48 = vpop.f32.mrb[68].mxu0 }
 0x4ca   : > { %v1594_v49 = vadd.f32 %v3049_v48, %v4331_v54  ;;  %v1585_v50 = vpop.f32.mrb[69].mxu0 }
 0x4cb   : > { %v1586_v51 = vadd.f32 %v4331_v54, %v1585_v50  ;;  %v3050_v52 = vpop.f32.mrb[70].mxu0 }
 0x4cc   : > { %v1597_v53 = vadd.f32 %v3050_v52, %v4331_v54  ;;  %v1588_v33 = vpop.f32.mrb[71].mxu0  ;;  %v1618_v56 = vmax.f32 %v1594_v49, 0.0 }
 0x4cd   : > { %v1589_v55 = vadd.f32 %v4331_v54, %v1588_v33  ;;  %v1616_v58 = vmax.f32 %v1586_v51, 0.0  ;;  %v3298_v54 = vld [vmem:[#allocation13 + $0x10] ss:$8 sps:$4 sm:$0xff]  }
 0x4ce   : > { %v1619_v57 = vmax.f32 %v1597_v53, 0.0  ;;  %2143 = vmatpush1.bf16.msra.mxu1 %v3298_v54 }
 0x4cf   : > { %v1617_v59 = vmax.f32 %v1589_v55, 0.0  ;;  %2144 = vmatprep.subr.bf16.mxu1 %v3303_v2 }
 0x4d0   : > { %v1629_v60 = vpack.c.bf16 %v1619_v57, %v1618_v56 }
 0x4d1   : > { %v1628_v61 = vpack.c.bf16 %v1617_v59, %v1616_v58 }
 0x4d2   : > { %2145 = vmatpush1.bf16.msra.mxu1 %v3301_v3 }
 0x4d3   : > { %3069 = vmatprep.mubr.msk.bf16.mxu1 %vm1452_vm2, %v1628_v61  ;;  %2146 = vmatprep.subr.bf16.mxu1 %v3306_v4 }
 0x4d4   : > { %3070 = vmatmul.mubr.msk.bf16.gmra.mrb[44].mxu1 %vm1452_vm2, %v1629_v60 }
 0x4d6   : > { %2147 = vmatpush1.bf16.msra.mxu1 %v3304_v5 }
 0x4d7   : > { %2148 = vmatprep.subr.bf16.mxu1 %v3309_v6 }
 0x4da   : > { %2149 = vmatpush1.bf16.msra.mxu1 %v3307_v7 }
 0x4db   : > { %2150 = vmatprep.subr.bf16.mxu1 %v3312_v8 }
 0x4de   : > { %2151 = vmatpush1.bf16.msra.mxu1 %v3310_v9 }
 0x4df   : > { %2152 = vmatprep.subr.bf16.mxu1 %v3315_v10 }
 0x4e2   : > { %2153 = vmatpush1.bf16.msra.mxu1 %v3313_v11 }
 0x567   : > { %v3055_v13 = vpop.f32.mrb[28].mxu1 }
 0x568   : > { %v1720_v14 = vadd.f32 %v3055_v13, %v4369_v12  ;;  %v1711_v15 = vpop.f32.mrb[29].mxu1 }
 0x569   : > { %v1712_v16 = vadd.f32 %v4369_v12, %v1711_v15  ;;  %v3056_v17 = vpop.f32.mrb[30].mxu1 }
 0x56a   : > { %v1723_v18 = vadd.f32 %v3056_v17, %v4369_v12  ;;  %v1714_v19 = vpop.f32.mrb[31].mxu1  ;;  %v1792_v21 = vmax.f32 %v1720_v14, 0.0 }
 0x56b   : > { %v1715_v20 = vadd.f32 %v4369_v12, %v1714_v19  ;;  %v1790_v23 = vmax.f32 %v1712_v16, 0.0 }
 0x56c   : > { %v1793_v22 = vmax.f32 %v1723_v18, 0.0 }
 0x56d   : > { %v1791_v24 = vmax.f32 %v1715_v20, 0.0  ;;  %v3318_v20 = vld [vmem:[#allocation13 + $0x74] ss:$8 sps:$4 sm:$0xff]  }
 0x56e   : > { %v1811_v25 = vpack.c.bf16 %v1793_v22, %v1792_v21  ;;  %v3316_v21 = vld [vmem:[#allocation13 + $0x70] ss:$8 sps:$4 sm:$0xff]   ;;  %2154 = vmatprep.subr.bf16.mxu1 %v3318_v20  ;;  %v3768_v22 = vmov 0  }
 0x56f   : > { %v1810_v26 = vpack.c.bf16 %v1791_v24, %v1790_v23  ;;  %2155 = vmatpush1.bf16.msra.mxu1 %v3316_v21  ;;  %2172 = vmatprep.mubr.bf16.mxu1 %v3768_v22 }
 0x571   : > { %3081 = vmatprep.mubr.msk.bf16.mxu0 %vm1264_vm1, %v1810_v26 }
 0x572   : > { %3082 = vmatmul.mubr.msk.bf16.vlgmr.msra.gmra.mrb[72].mxu0 %vm1264_vm1, %v1811_v25 }
 0x577   : > { %v3059_v27 = vpop.f32.mrb[32].mxu1 }
 0x578   : > { %v1736_v28 = vadd.f32 %v3059_v27, %v4369_v12  ;;  %v1727_v44 = vpop.f32.mrb[33].mxu1 }
 0x579   : > { %v1728_v29 = vadd.f32 %v4369_v12, %v1727_v44  ;;  %v3060_v30 = vpop.f32.mrb[34].mxu1 }
 0x57a   : > { %v1739_v31 = vadd.f32 %v3060_v30, %v4369_v12  ;;  %v1730_v32 = vpop.f32.mrb[35].mxu1  ;;  %v1796_v34 = vmax.f32 %v1736_v28, 0.0 }
 0x57b   : > { %v1731_v46 = vadd.f32 %v4369_v12, %v1730_v32  ;;  %v1794_v36 = vmax.f32 %v1728_v29, 0.0 }
 0x57c   : > { %v1797_v35 = vmax.f32 %v1739_v31, 0.0 }
 0x57d   : > { %v1795_v37 = vmax.f32 %v1731_v46, 0.0 }
 0x57e   : > { %v1813_v38 = vpack.c.bf16 %v1797_v35, %v1796_v34 }
 0x57f   : > { %v1812_v39 = vpack.c.bf16 %v1795_v37, %v1794_v36 }
 0x581   : > { %3085 = vmatprep.mubr.msk.bf16.mxu0 %vm1264_vm1, %v1812_v39 }
 0x582   : > { %3086 = vmatmul.mubr.msk.bf16.gmra.mrb[76].mxu0 %vm1264_vm1, %v1813_v38 }
 0x587   : > { %v3063_v40 = vpop.f32.mrb[36].mxu1 }
 0x588   : > { %v1752_v41 = vadd.f32 %v3063_v40, %v4369_v12  ;;  %v1743_v42 = vpop.f32.mrb[37].mxu1 }
 0x589   : > { %v1744_v43 = vadd.f32 %v4369_v12, %v1743_v42  ;;  %v3064_v45 = vpop.f32.mrb[38].mxu1 }
 0x58a   : > { %v1755_v47 = vadd.f32 %v3064_v45, %v4369_v12  ;;  %v1746_v48 = vpop.f32.mrb[39].mxu1  ;;  %v1800_v50 = vmax.f32 %v1752_v41, 0.0 }
 0x58b   : > { %v1747_v49 = vadd.f32 %v4369_v12, %v1746_v48  ;;  %v1798_v52 = vmax.f32 %v1744_v43, 0.0 }
 0x58c   : > { %v1801_v51 = vmax.f32 %v1755_v47, 0.0 }
 0x58d   : > { %v1799_v53 = vmax.f32 %v1747_v49, 0.0 }
 0x58e   : > { %v1815_v33 = vpack.c.bf16 %v1801_v51, %v1800_v50 }
 0x58f   : > { %v1814_v55 = vpack.c.bf16 %v1799_v53, %v1798_v52 }
 0x591   : > { %3089 = vmatprep.mubr.msk.bf16.mxu0 %vm1264_vm1, %v1814_v55 }
 0x592   : > { %3090 = vmatmul.mubr.msk.bf16.gmra.mrb[80].mxu0 %vm1264_vm1, %v1815_v33 }
 0x597   : > { %v3067_v56 = vpop.f32.mrb[40].mxu1 }
 0x598   : > { %v1768_v57 = vadd.f32 %v3067_v56, %v4369_v12  ;;  %v1759_v58 = vpop.f32.mrb[41].mxu1 }
 0x599   : > { %v1760_v59 = vadd.f32 %v4369_v12, %v1759_v58  ;;  %v3068_v60 = vpop.f32.mrb[42].mxu1 }
 0x59a   : > { %v1771_v61 = vadd.f32 %v3068_v60, %v4369_v12  ;;  %v1762_v62 = vpop.f32.mrb[43].mxu1  ;;  %v1804_v0 = vmax.f32 %v1768_v57, 0.0 }
 0x59b   : > { %v1763_v63 = vadd.f32 %v4369_v12, %v1762_v62  ;;  %v1802_v54 = vmax.f32 %v1760_v59, 0.0 }
 0x59c   : > { %v1805_v1 = vmax.f32 %v1771_v61, 0.0 }
 0x59d   : > { %v1803_v2 = vmax.f32 %v1763_v63, 0.0 }
 0x59e   : > { %v1817_v3 = vpack.c.bf16 %v1805_v1, %v1804_v0 }
 0x59f   : > { %v1816_v4 = vpack.c.bf16 %v1803_v2, %v1802_v54 }
 0x5a1   : > { %3093 = vmatprep.mubr.msk.bf16.mxu0 %vm1264_vm1, %v1816_v4 }
 0x5a2   : > { %3094 = vmatmul.mubr.msk.bf16.gmra.mrb[84].mxu0 %vm1264_vm1, %v1817_v3 }
 0x5a7   : > { %v3071_v5 = vpop.f32.mrb[44].mxu1 }
 0x5a8   : > { %v1784_v6 = vadd.f32 %v3071_v5, %v4369_v12  ;;  %v1775_v7 = vpop.f32.mrb[45].mxu1 }
 0x5a9   : > { %v1776_v8 = vadd.f32 %v4369_v12, %v1775_v7  ;;  %v3072_v9 = vpop.f32.mrb[46].mxu1 }
 0x5aa   : > { %v1787_v10 = vadd.f32 %v3072_v9, %v4369_v12  ;;  %v1778_v11 = vpop.f32.mrb[47].mxu1  ;;  %v1808_v14 = vmax.f32 %v1784_v6, 0.0 }
 0x5ab   : > { %v1779_v13 = vadd.f32 %v4369_v12, %v1778_v11  ;;  %v1806_v16 = vmax.f32 %v1776_v8, 0.0  ;;  %v4405_v12 = vld [vmem:[%s4651_s12] ss:$0 sm:$0xff] }
 0x5ac   : > { %v1809_v15 = vmax.f32 %v1787_v10, 0.0 }
 0x5ad   : > { %v1807_v17 = vmax.f32 %v1779_v13, 0.0 }
 0x5ae   : > { %v1819_v18 = vpack.c.bf16 %v1809_v15, %v1808_v14 }
 0x5af   : > { %v1818_v19 = vpack.c.bf16 %v1807_v17, %v1806_v16 }
 0x5b1   : > { %3097 = vmatprep.mubr.msk.bf16.mxu0 %vm1264_vm1, %v1818_v19 }
 0x5b2   : > { %3098 = vmatmul.mubr.msk.bf16.gmra.mrb[88].mxu0 %vm1264_vm1, %v1819_v18 }
 0x645   : > { %v3083_v23 = vpop.f32.mrb[72].mxu0 }
 0x646   : > { %v1932_v24 = vadd.f32 %v3083_v23, %v4405_v12  ;;  %v1923_v25 = vpop.f32.mrb[73].mxu0 }
 0x647   : > { %v1924_v26 = vadd.f32 %v4405_v12, %v1923_v25  ;;  %v3084_v27 = vpop.f32.mrb[74].mxu0 }
 0x648   : > { %v1935_v28 = vadd.f32 %v3084_v27, %v4405_v12  ;;  %v1926_v44 = vpop.f32.mrb[75].mxu0  ;;  %v2004_v30 = vmax.f32 %v1932_v24, 0.0 }
 0x649   : > { %v1927_v29 = vadd.f32 %v4405_v12, %v1926_v44  ;;  %v2002_v32 = vmax.f32 %v1924_v26, 0.0 }
 0x64a   : > { %v2005_v31 = vmax.f32 %v1935_v28, 0.0 }
 0x64b   : > { %v2003_v46 = vmax.f32 %v1927_v29, 0.0 }
 0x64c   : > { %v2023_v34 = vpack.c.bf16 %v2005_v31, %v2004_v30  ;;  %v2050_v30 = vlaneseq }
 0x64d   : > { %v2022_v35 = vpack.c.bf16 %v2003_v46, %v2002_v32  ;;  %v2048_v46 = vld [vmem:[%s4652_s4] sm:$0x3] }
 0x64e   : > { %v2051_v31 = vshrl.u32 %v2050_v30, 7 }
 0x64f   : > { %2173 = vmatmul.mubr.bf16.vlgmr.msra.gmra.mrb[48].mxu1 %v2022_v35 }
 0x650   : > { %2182 = vmatprep.mubr.bf16.mxu1 %v3768_v22  ;;  %v2052_v32 = vsub.s32 0, %v2051_v31 }
 0x652   : > { %v4439_v35 = vrot.slane %v2048_v46, %v2052_v32 }
 0x655   : > { %v3087_v36 = vpop.f32.mrb[76].mxu0 }
 0x656   : > { %v1948_v37 = vadd.f32 %v3087_v36, %v4405_v12  ;;  %v1939_v38 = vpop.f32.mrb[77].mxu0 }
 0x657   : > { %v1940_v39 = vadd.f32 %v4405_v12, %v1939_v38  ;;  %v3088_v40 = vpop.f32.mrb[78].mxu0  ;;  %2183 = vmatmul.mubr.bf16.gmra.mrb[52].mxu1 %v2023_v34  ;;  %v2056_v34 = vsub.s32 1, %v2051_v31 }
 0x658   : > { %v1951_v41 = vadd.f32 %v3088_v40, %v4405_v12  ;;  %v1942_v42 = vpop.f32.mrb[79].mxu0  ;;  %2192 = vmatprep.mubr.bf16.mxu1 %v3768_v22  ;;  %v2008_v45 = vmax.f32 %v1948_v37, 0.0 }
 0x659   : > { %v1943_v43 = vadd.f32 %v4405_v12, %v1942_v42  ;;  %v2006_v48 = vmax.f32 %v1940_v39, 0.0 }
 0x65a   : > { %v2009_v47 = vmax.f32 %v1951_v41, 0.0 }
 0x65b   : > { %v2007_v49 = vmax.f32 %v1943_v43, 0.0 }
 0x65c   : > { %v2025_v50 = vpack.c.bf16 %v2009_v47, %v2008_v45 }
 0x65d   : > { %v2024_v51 = vpack.c.bf16 %v2007_v49, %v2006_v48 }
 0x65f   : > { %2193 = vmatmul.mubr.bf16.gmra.mrb[56].mxu1 %v2024_v51 }
 0x660   : > { %2202 = vmatprep.mubr.bf16.mxu1 %v3768_v22 }
 0x665   : > { %v3091_v52 = vpop.f32.mrb[80].mxu0 }
 0x666   : > { %v1964_v53 = vadd.f32 %v3091_v52, %v4405_v12  ;;  %v1955_v33 = vpop.f32.mrb[81].mxu0 }
 0x667   : > { %v1956_v55 = vadd.f32 %v4405_v12, %v1955_v33  ;;  %v3092_v56 = vpop.f32.mrb[82].mxu0  ;;  %2203 = vmatmul.mubr.bf16.gmra.mrb[60].mxu1 %v2025_v50 }
 0x668   : > { %v1967_v57 = vadd.f32 %v3092_v56, %v4405_v12  ;;  %v1958_v58 = vpop.f32.mrb[83].mxu0  ;;  %2212 = vmatprep.mubr.bf16.mxu1 %v3768_v22  ;;  %v2012_v60 = vmax.f32 %v1964_v53, 0.0 }
 0x669   : > { %v1959_v59 = vadd.f32 %v4405_v12, %v1958_v58  ;;  %v2010_v62 = vmax.f32 %v1956_v55, 0.0 }
 0x66a   : > { %v2013_v61 = vmax.f32 %v1967_v57, 0.0 }
 0x66b   : > { %v2011_v63 = vmax.f32 %v1959_v59, 0.0 }
 0x66c   : > { %v2027_v0 = vpack.c.bf16 %v2013_v61, %v2012_v60 }
 0x66d   : > { %v2026_v1 = vpack.c.bf16 %v2011_v63, %v2010_v62 }
 0x66f   : > { %2213 = vmatmul.mubr.bf16.gmra.mrb[64].mxu1 %v2026_v1 }
 0x670   : > { %2222 = vmatprep.mubr.bf16.mxu1 %v3768_v22 }
 0x675   : > { %v3095_v54 = vpop.f32.mrb[84].mxu0 }
 0x676   : > { %v1980_v2 = vadd.f32 %v3095_v54, %v4405_v12  ;;  %v1971_v3 = vpop.f32.mrb[85].mxu0 }
 0x677   : > { %v1972_v4 = vadd.f32 %v4405_v12, %v1971_v3  ;;  %v3096_v5 = vpop.f32.mrb[86].mxu0  ;;  %2223 = vmatmul.mubr.bf16.gmra.mrb[68].mxu1 %v2027_v0 }
 0x678   : > { %v1983_v6 = vadd.f32 %v3096_v5, %v4405_v12  ;;  %v1974_v7 = vpop.f32.mrb[87].mxu0  ;;  %2232 = vmatprep.mubr.bf16.mxu1 %v3768_v22  ;;  %v2016_v9 = vmax.f32 %v1980_v2, 0.0 }
 0x679   : > { %v1975_v8 = vadd.f32 %v4405_v12, %v1974_v7  ;;  %v2014_v11 = vmax.f32 %v1972_v4, 0.0 }
 0x67a   : > { %v2017_v10 = vmax.f32 %v1983_v6, 0.0 }
 0x67b   : > { %v2015_v13 = vmax.f32 %v1975_v8, 0.0 }
 0x67c   : > { %v2029_v14 = vpack.c.bf16 %v2017_v10, %v2016_v9 }
 0x67d   : > { %v2028_v15 = vpack.c.bf16 %v2015_v13, %v2014_v11 }
 0x67f   : > { %2233 = vmatmul.mubr.bf16.gmra.mrb[72].mxu1 %v2028_v15 }
 0x680   : > { %2242 = vmatprep.mubr.bf16.mxu1 %v3768_v22 }
 0x685   : > { %v3099_v16 = vpop.f32.mrb[88].mxu0 }
 0x686   : > { %v1996_v17 = vadd.f32 %v3099_v16, %v4405_v12  ;;  %v1987_v18 = vpop.f32.mrb[89].mxu0 }
 0x687   : > { %v1988_v19 = vadd.f32 %v4405_v12, %v1987_v18  ;;  %v3100_v20 = vpop.f32.mrb[90].mxu0  ;;  %2243 = vmatmul.mubr.bf16.gmra.mrb[76].mxu1 %v2029_v14 }
 0x688   : > { %v1999_v21 = vadd.f32 %v3100_v20, %v4405_v12  ;;  %v1990_v23 = vpop.f32.mrb[91].mxu0  ;;  %2252 = vmatprep.mubr.bf16.mxu1 %v3768_v22  ;;  %v2020_v25 = vmax.f32 %v1996_v17, 0.0 }
 0x689   : > { %v1991_v24 = vadd.f32 %v4405_v12, %v1990_v23  ;;  %v2018_v27 = vmax.f32 %v1988_v19, 0.0  ;;  %v4441_v12 = vrot.slane %v2048_v46, %v2056_v34 }
 0x68a   : > { %v2021_v26 = vmax.f32 %v1999_v21, 0.0 }
 0x68b   : > { %v2019_v28 = vmax.f32 %v1991_v24, 0.0 }
 0x68c   : > { %v2031_v44 = vpack.c.bf16 %v2021_v26, %v2020_v25 }
 0x68d   : > { %v2030_v29 = vpack.c.bf16 %v2019_v28, %v2018_v27 }
 0x68f   : > { %2253 = vmatmul.mubr.bf16.gmra.mrb[80].mxu1 %v2030_v29 }
 0x690   : > { %2262 = vmatprep.mubr.bf16.mxu1 %v3768_v22 }
 0x697   : > { %2263 = vmatmul.mubr.bf16.gmra.mrb[84].mxu1 %v2031_v44 }
 0x722   : > { %v2174_v36 = vpop.f32.mrb[48].mxu1 }
 0x723   : > { %v2175_v37 = vadd.f32 %v2174_v36, %v4439_v35  ;;  %v2176_v38 = vpop.f32.mrb[49].mxu1 }
 0x724   : > { %v2177_v39 = vadd.f32 %v2176_v38, %v4441_v12  ;;  %v2178_v22 = vpop.f32.mrb[50].mxu1 }
 0x725   : > { %v2273_v40 = vsub.f32 0.0, %v2175_v37  ;;  %v2179_v41 = vadd.f32 %v2178_v22, %v4439_v35  ;;  %v2180_v42 = vpop.f32.mrb[51].mxu1 }
 0x726   : > { %v2274_v43 = vsub.f32 0.0, %v2177_v39  ;;  %v2181_v45 = vadd.f32 %v2180_v42, %v4441_v12 }
 0x727   : > { %v2313_v47 = vmul.f32 1.442695, %v2273_v40  ;;  %v2275_v48 = vsub.f32 0.0, %v2179_v41 }
 0x728   : > { %v2315_v49 = vmul.f32 1.442695, %v2274_v43  ;;  %v2276_v50 = vsub.f32 0.0, %v2181_v45 }
 0x729   : > { %3319 = vpow2.f32 %v2313_v47  ;;  %v2317_v51 = vmul.f32 1.442695, %v2275_v48 }
 0x72a   : > { %3321 = vpow2.f32 %v2315_v49  ;;  %v2319_v52 = vmul.f32 1.442695, %v2276_v50  ;;  %v2184_v53 = vpop.f32.mrb[52].mxu1 }
 0x72b   : > { %3323 = vpow2.f32 %v2317_v51  ;;  %v2185_v33 = vadd.f32 %v2184_v53, %v4439_v35  ;;  %v2186_v55 = vpop.f32.mrb[53].mxu1 }
 0x72c   : > { %3325 = vpow2.f32 %v2319_v52  ;;  %v2187_v56 = vadd.f32 %v2186_v55, %v4441_v12  ;;  %v2188_v57 = vpop.f32.mrb[54].mxu1 }
 0x72d   : > { %v2277_v58 = vsub.f32 0.0, %v2185_v33  ;;  %v2189_v59 = vadd.f32 %v2188_v57, %v4439_v35  ;;  %v2190_v60 = vpop.f32.mrb[55].mxu1 }
 0x72e   : > { %v2278_v61 = vsub.f32 0.0, %v2187_v56  ;;  %v2191_v62 = vadd.f32 %v2190_v60, %v4441_v12 }
 0x72f   : > { %v2321_v63 = vmul.f32 1.442695, %v2277_v58  ;;  %v2279_v0 = vsub.f32 0.0, %v2189_v59 }
 0x730   : > { %v2323_v1 = vmul.f32 1.442695, %v2278_v61  ;;  %v2280_v54 = vsub.f32 0.0, %v2191_v62 }
 0x731   : > { %3327 = vpow2.f32 %v2321_v63  ;;  %v2325_v2 = vmul.f32 1.442695, %v2279_v0 }
 0x732   : > { %3329 = vpow2.f32 %v2323_v1  ;;  %v2327_v3 = vmul.f32 1.442695, %v2280_v54  ;;  %v2194_v4 = vpop.f32.mrb[56].mxu1 }
 0x733   : > { %v3320_v5 = vpop.eup %3319  ;;  %3331 = vpow2.f32 %v2325_v2  ;;  %v2195_v6 = vadd.f32 %v2194_v4, %v4439_v35  ;;  %v2196_v7 = vpop.f32.mrb[57].mxu1 }
 0x734   : > { %v3322_v8 = vpop.eup %3321  ;;  %v2393_v9 = vadd.f32 1.0, %v3320_v5  ;;  %3333 = vpow2.f32 %v2327_v3  ;;  %v2197_v10 = vadd.f32 %v2196_v7, %v4441_v12  ;;  %v2198_v11 = vpop.f32.mrb[58].mxu1 }
 0x735   : > { %v3324_v13 = vpop.eup %3323  ;;  %v2394_v14 = vadd.f32 1.0, %v3322_v8  ;;  %v2281_v15 = vsub.f32 0.0, %v2195_v6  ;;  %v2199_v16 = vadd.f32 %v2198_v11, %v4439_v35  ;;  %v2200_v17 = vpop.f32.mrb[59].mxu1 }
 0x736   : > { %v3326_v18 = vpop.eup %3325  ;;  %3335 = vrcp.f32 %v2393_v9  ;;  %v2395_v19 = vadd.f32 1.0, %v3324_v13  ;;  %v2282_v20 = vsub.f32 0.0, %v2197_v10  ;;  %v2201_v21 = vadd.f32 %v2200_v17, %v4441_v12 }
 0x737   : > { %3337 = vrcp.f32 %v2394_v14  ;;  %v2396_v23 = vadd.f32 1.0, %v3326_v18  ;;  %v2329_v24 = vmul.f32 1.442695, %v2281_v15  ;;  %v2283_v25 = vsub.f32 0.0, %v2199_v16 }
 0x738   : > { %3339 = vrcp.f32 %v2395_v19  ;;  %v2331_v26 = vmul.f32 1.442695, %v2282_v20  ;;  %v2284_v27 = vsub.f32 0.0, %v2201_v21 }
 0x739   : > { %3341 = vrcp.f32 %v2396_v23  ;;  %v2333_v28 = vmul.f32 1.442695, %v2283_v25 }
 0x73a   : > { %3343 = vpow2.f32 %v2329_v24  ;;  %v2335_v44 = vmul.f32 1.442695, %v2284_v27  ;;  %v2204_v29 = vpop.f32.mrb[60].mxu1 }
 0x73b   : > { %v3328_v30 = vpop.eup %3327  ;;  %3345 = vpow2.f32 %v2331_v26  ;;  %v2205_v31 = vadd.f32 %v2204_v29, %v4439_v35  ;;  %v2206_v32 = vpop.f32.mrb[61].mxu1 }
 0x73c   : > { %v3330_v46 = vpop.eup %3329  ;;  %v2397_v34 = vadd.f32 1.0, %v3328_v30  ;;  %3347 = vpow2.f32 %v2333_v28  ;;  %v2207_v36 = vadd.f32 %v2206_v32, %v4441_v12  ;;  %v2208_v37 = vpop.f32.mrb[62].mxu1 }
 0x73d   : > { %v3332_v38 = vpop.eup %3331  ;;  %v2398_v39 = vadd.f32 1.0, %v3330_v46  ;;  %3349 = vpow2.f32 %v2335_v44  ;;  %v2285_v22 = vsub.f32 0.0, %v2205_v31  ;;  %v2209_v40 = vadd.f32 %v2208_v37, %v4439_v35  ;;  %v2210_v41 = vpop.f32.mrb[63].mxu1 }
 0x73e   : > { %v3334_v42 = vpop.eup %3333  ;;  %3351 = vrcp.f32 %v2397_v34  ;;  %v2399_v43 = vadd.f32 1.0, %v3332_v38  ;;  %v2286_v45 = vsub.f32 0.0, %v2207_v36  ;;  %v2211_v47 = vadd.f32 %v2210_v41, %v4441_v12 }
 0x73f   : > { %3353 = vrcp.f32 %v2398_v39  ;;  %v2400_v48 = vadd.f32 1.0, %v3334_v42  ;;  %v2337_v49 = vmul.f32 1.442695, %v2285_v22  ;;  %v2287_v50 = vsub.f32 0.0, %v2209_v40 }
 0x740   : > { %v3336_v51 = vpop.eup %3335  ;;  %3355 = vrcp.f32 %v2399_v43  ;;  %v2339_v52 = vmul.f32 1.442695, %v2286_v45  ;;  %v2288_v53 = vsub.f32 0.0, %v2211_v47 }
 0x741   : > { %v3338_v33 = vpop.eup %3337  ;;  %2473 = vst [vmem:[%s4462_s25] sm:$0xff] %v3336_v51  ;;  %3357 = vrcp.f32 %v2400_v48  ;;  %v2341_v55 = vmul.f32 1.442695, %v2287_v50 }
 0x742   : > { %v3340_v56 = vpop.eup %3339  ;;  %2474 = vst [vmem:[%s4462_s25 + $0x8] sm:$0xff] %v3338_v33  ;;  %3359 = vpow2.f32 %v2337_v49  ;;  %v2343_v57 = vmul.f32 1.442695, %v2288_v53  ;;  %v2214_v58 = vpop.f32.mrb[64].mxu1 }
 0x743   : > { %v3342_v59 = vpop.eup %3341  ;;  %2475 = vst [vmem:[%s4462_s25 + $0x10] sm:$0xff] %v3340_v56  ;;  %3361 = vpow2.f32 %v2339_v52  ;;  %v2215_v60 = vadd.f32 %v2214_v58, %v4439_v35  ;;  %v2216_v61 = vpop.f32.mrb[65].mxu1 }
 0x744   : > { %v3344_v62 = vpop.eup %3343  ;;  %2476 = vst [vmem:[%s4462_s25 + $0x18] sm:$0xff] %v3342_v59  ;;  %3363 = vpow2.f32 %v2341_v55  ;;  %v2217_v63 = vadd.f32 %v2216_v61, %v4441_v12  ;;  %v2218_v0 = vpop.f32.mrb[66].mxu1 }
 0x745   : > { %v3346_v1 = vpop.eup %3345  ;;  %v2401_v54 = vadd.f32 1.0, %v3344_v62  ;;  %3365 = vpow2.f32 %v2343_v57  ;;  %v2289_v2 = vsub.f32 0.0, %v2215_v60  ;;  %v2219_v3 = vadd.f32 %v2218_v0, %v4439_v35  ;;  %v2220_v4 = vpop.f32.mrb[67].mxu1 }
 0x746   : > { %v3348_v5 = vpop.eup %3347  ;;  %v2402_v6 = vadd.f32 1.0, %v3346_v1  ;;  %v2290_v7 = vsub.f32 0.0, %v2217_v63  ;;  %v2221_v8 = vadd.f32 %v2220_v4, %v4441_v12 }
 0x747   : > { %v3350_v9 = vpop.eup %3349  ;;  %3367 = vrcp.f32 %v2401_v54  ;;  %v2403_v10 = vadd.f32 1.0, %v3348_v5  ;;  %v2345_v11 = vmul.f32 1.442695, %v2289_v2  ;;  %v2291_v13 = vsub.f32 0.0, %v2219_v3 }
 0x748   : > { %v3352_v14 = vpop.eup %3351  ;;  %3369 = vrcp.f32 %v2402_v6  ;;  %v2404_v15 = vadd.f32 1.0, %v3350_v9  ;;  %v2347_v16 = vmul.f32 1.442695, %v2290_v7  ;;  %v2292_v17 = vsub.f32 0.0, %v2221_v8 }
 0x749   : > { %v3354_v18 = vpop.eup %3353  ;;  %2477 = vst [vmem:[%s4462_s25 + $0x20] sm:$0xff] %v3352_v14  ;;  %3371 = vrcp.f32 %v2403_v10  ;;  %v2349_v19 = vmul.f32 1.442695, %v2291_v13 }
 0x74a   : > { %v3356_v20 = vpop.eup %3355  ;;  %2478 = vst [vmem:[%s4462_s25 + $0x28] sm:$0xff] %v3354_v18  ;;  %3373 = vrcp.f32 %v2404_v15  ;;  %v2351_v21 = vmul.f32 1.442695, %v2292_v17  ;;  %v2224_v23 = vpop.f32.mrb[68].mxu1 }
 0x74b   : > { %v3358_v24 = vpop.eup %3357  ;;  %2479 = vst [vmem:[%s4462_s25 + $0x30] sm:$0xff] %v3356_v20  ;;  %3375 = vpow2.f32 %v2345_v11  ;;  %v2225_v25 = vadd.f32 %v2224_v23, %v4439_v35  ;;  %v2226_v26 = vpop.f32.mrb[69].mxu1 }
 0x74c   : > { %v3360_v27 = vpop.eup %3359  ;;  %2480 = vst [vmem:[%s4462_s25 + $0x38] sm:$0xff] %v3358_v24  ;;  %3377 = vpow2.f32 %v2347_v16  ;;  %v2227_v28 = vadd.f32 %v2226_v26, %v4441_v12  ;;  %v2228_v44 = vpop.f32.mrb[70].mxu1 }
 0x74d   : > { %v3362_v29 = vpop.eup %3361  ;;  %v2405_v30 = vadd.f32 1.0, %v3360_v27  ;;  %3379 = vpow2.f32 %v2349_v19  ;;  %v2293_v31 = vsub.f32 0.0, %v2225_v25  ;;  %v2229_v32 = vadd.f32 %v2228_v44, %v4439_v35  ;;  %v2230_v46 = vpop.f32.mrb[71].mxu1 }
 0x74e   : > { %v3364_v34 = vpop.eup %3363  ;;  %v2406_v36 = vadd.f32 1.0, %v3362_v29  ;;  %3381 = vpow2.f32 %v2351_v21  ;;  %v2294_v37 = vsub.f32 0.0, %v2227_v28  ;;  %v2231_v38 = vadd.f32 %v2230_v46, %v4441_v12 }
 0x74f   : > { %v3366_v39 = vpop.eup %3365  ;;  %3383 = vrcp.f32 %v2405_v30  ;;  %v2407_v22 = vadd.f32 1.0, %v3364_v34  ;;  %v2353_v40 = vmul.f32 1.442695, %v2293_v31  ;;  %v2295_v41 = vsub.f32 0.0, %v2229_v32 }
 0x750   : > { %3385 = vrcp.f32 %v2406_v36  ;;  %v2408_v42 = vadd.f32 1.0, %v3366_v39  ;;  %v2355_v43 = vmul.f32 1.442695, %v2294_v37  ;;  %v2296_v45 = vsub.f32 0.0, %v2231_v38 }
 0x751   : > { %v3368_v47 = vpop.eup %3367  ;;  %3387 = vrcp.f32 %v2407_v22  ;;  %v2357_v48 = vmul.f32 1.442695, %v2295_v41 }
 0x752   : > { %v3370_v49 = vpop.eup %3369  ;;  %2481 = vst [vmem:[%s4462_s25 + $0x40] sm:$0xff] %v3368_v47  ;;  %3389 = vrcp.f32 %v2408_v42  ;;  %v2359_v50 = vmul.f32 1.442695, %v2296_v45  ;;  %v2234_v51 = vpop.f32.mrb[72].mxu1 }
 0x753   : > { %v3372_v52 = vpop.eup %3371  ;;  %2482 = vst [vmem:[%s4462_s25 + $0x48] sm:$0xff] %v3370_v49  ;;  %3391 = vpow2.f32 %v2353_v40  ;;  %v2235_v53 = vadd.f32 %v2234_v51, %v4439_v35  ;;  %v2236_v33 = vpop.f32.mrb[73].mxu1 }
 0x754   : > { %v3374_v55 = vpop.eup %3373  ;;  %2483 = vst [vmem:[%s4462_s25 + $0x50] sm:$0xff] %v3372_v52  ;;  %3393 = vpow2.f32 %v2355_v43  ;;  %v2237_v56 = vadd.f32 %v2236_v33, %v4441_v12  ;;  %v2238_v57 = vpop.f32.mrb[74].mxu1 }
 0x755   : > { %v3376_v58 = vpop.eup %3375  ;;  %2484 = vst [vmem:[%s4462_s25 + $0x58] sm:$0xff] %v3374_v55  ;;  %3395 = vpow2.f32 %v2357_v48  ;;  %v2297_v59 = vsub.f32 0.0, %v2235_v53  ;;  %v2239_v60 = vadd.f32 %v2238_v57, %v4439_v35  ;;  %v2240_v61 = vpop.f32.mrb[75].mxu1 }
 0x756   : > { %v3378_v62 = vpop.eup %3377  ;;  %v2409_v63 = vadd.f32 1.0, %v3376_v58  ;;  %3397 = vpow2.f32 %v2359_v50  ;;  %v2298_v0 = vsub.f32 0.0, %v2237_v56  ;;  %v2241_v1 = vadd.f32 %v2240_v61, %v4441_v12 }
 0x757   : > { %v3380_v54 = vpop.eup %3379  ;;  %v2410_v2 = vadd.f32 1.0, %v3378_v62  ;;  %v2299_v3 = vsub.f32 0.0, %v2239_v60  ;;  %v2361_v6 = vmul.f32 1.442695, %v2297_v59 }
 0x758   : > { %v3382_v4 = vpop.eup %3381  ;;  %3399 = vrcp.f32 %v2409_v63  ;;  %v2411_v5 = vadd.f32 1.0, %v3380_v54  ;;  %v2300_v7 = vsub.f32 0.0, %v2241_v1  ;;  %v2363_v10 = vmul.f32 1.442695, %v2298_v0 }
 0x759   : > { %v3384_v8 = vpop.eup %3383  ;;  %3401 = vrcp.f32 %v2410_v2  ;;  %v2412_v9 = vadd.f32 1.0, %v3382_v4  ;;  %v2365_v13 = vmul.f32 1.442695, %v2299_v3 }
 0x75a   : > { %v3386_v11 = vpop.eup %3385  ;;  %2485 = vst [vmem:[%s4462_s25 + $0x60] sm:$0xff] %v3384_v8  ;;  %3403 = vrcp.f32 %v2411_v5  ;;  %v2244_v14 = vpop.f32.mrb[76].mxu1  ;;  %v2367_v16 = vmul.f32 1.442695, %v2300_v7 }
 0x75b   : > { %v3388_v15 = vpop.eup %3387  ;;  %2486 = vst [vmem:[%s4462_s25 + $0x68] sm:$0xff] %v3386_v11  ;;  %3405 = vrcp.f32 %v2412_v9  ;;  %v2245_v17 = vadd.f32 %v2244_v14, %v4439_v35  ;;  %v2246_v18 = vpop.f32.mrb[77].mxu1 }
 0x75c   : > { %v3390_v19 = vpop.eup %3389  ;;  %2487 = vst [vmem:[%s4462_s25 + $0x70] sm:$0xff] %v3388_v15  ;;  %3407 = vpow2.f32 %v2361_v6  ;;  %v2247_v20 = vadd.f32 %v2246_v18, %v4441_v12  ;;  %v2248_v21 = vpop.f32.mrb[78].mxu1 }
 0x75d   : > { %v3392_v23 = vpop.eup %3391  ;;  %2488 = vst [vmem:[%s4462_s25 + $0x78] sm:$0xff] %v3390_v19  ;;  %3409 = vpow2.f32 %v2363_v10  ;;  %v2301_v24 = vsub.f32 0.0, %v2245_v17  ;;  %v2249_v25 = vadd.f32 %v2248_v21, %v4439_v35  ;;  %v2250_v26 = vpop.f32.mrb[79].mxu1 }
 0x75e   : > { %v3394_v27 = vpop.eup %3393  ;;  %v2413_v28 = vadd.f32 1.0, %v3392_v23  ;;  %3411 = vpow2.f32 %v2365_v13  ;;  %v2302_v44 = vsub.f32 0.0, %v2247_v20  ;;  %v2251_v29 = vadd.f32 %v2250_v26, %v4441_v12 }
 0x75f   : > { %v3396_v30 = vpop.eup %3395  ;;  %v2414_v31 = vadd.f32 1.0, %v3394_v27  ;;  %3413 = vpow2.f32 %v2367_v16  ;;  %v2303_v32 = vsub.f32 0.0, %v2249_v25  ;;  %v2369_v36 = vmul.f32 1.442695, %v2301_v24 }
 0x760   : > { %v3398_v46 = vpop.eup %3397  ;;  %3415 = vrcp.f32 %v2413_v28  ;;  %v2415_v34 = vadd.f32 1.0, %v3396_v30  ;;  %v2304_v37 = vsub.f32 0.0, %v2251_v29  ;;  %v2371_v39 = vmul.f32 1.442695, %v2302_v44 }
 0x761   : > { %3417 = vrcp.f32 %v2414_v31  ;;  %v2416_v38 = vadd.f32 1.0, %v3398_v46  ;;  %v2373_v40 = vmul.f32 1.442695, %v2303_v32 }
 0x762   : > { %v3400_v22 = vpop.eup %3399  ;;  %3419 = vrcp.f32 %v2415_v34  ;;  %v2254_v41 = vpop.f32.mrb[80].mxu1  ;;  %v2375_v43 = vmul.f32 1.442695, %v2304_v37 }
 0x763   : > { %v3402_v42 = vpop.eup %3401  ;;  %2489 = vst [vmem:[%s4462_s25 + $0x80] sm:$0xff] %v3400_v22  ;;  %3421 = vrcp.f32 %v2416_v38  ;;  %v2255_v45 = vadd.f32 %v2254_v41, %v4439_v35  ;;  %v2256_v47 = vpop.f32.mrb[81].mxu1 }
 0x764   : > { %v3404_v48 = vpop.eup %3403  ;;  %2490 = vst [vmem:[%s4462_s25 + $0x88] sm:$0xff] %v3402_v42  ;;  %3423 = vpow2.f32 %v2369_v36  ;;  %v2257_v49 = vadd.f32 %v2256_v47, %v4441_v12  ;;  %v2258_v50 = vpop.f32.mrb[82].mxu1 }
 0x765   : > { %v3406_v51 = vpop.eup %3405  ;;  %2491 = vst [vmem:[%s4462_s25 + $0x90] sm:$0xff] %v3404_v48  ;;  %3425 = vpow2.f32 %v2371_v39  ;;  %v2305_v52 = vsub.f32 0.0, %v2255_v45  ;;  %v2259_v53 = vadd.f32 %v2258_v50, %v4439_v35  ;;  %v2260_v33 = vpop.f32.mrb[83].mxu1 }
 0x766   : > { %v3408_v55 = vpop.eup %3407  ;;  %2492 = vst [vmem:[%s4462_s25 + $0x98] sm:$0xff] %v3406_v51  ;;  %3427 = vpow2.f32 %v2373_v40  ;;  %v2306_v56 = vsub.f32 0.0, %v2257_v49  ;;  %v2261_v57 = vadd.f32 %v2260_v33, %v4441_v12 }
 0x767   : > { %v3410_v58 = vpop.eup %3409  ;;  %v2417_v59 = vadd.f32 1.0, %v3408_v55  ;;  %3429 = vpow2.f32 %v2375_v43  ;;  %v2307_v60 = vsub.f32 0.0, %v2259_v53  ;;  %v2377_v54 = vmul.f32 1.442695, %v2305_v52 }
 0x768   : > { %v3412_v61 = vpop.eup %3411  ;;  %v2418_v62 = vadd.f32 1.0, %v3410_v58  ;;  %v2308_v63 = vsub.f32 0.0, %v2261_v57  ;;  %v2379_v4 = vmul.f32 1.442695, %v2306_v56 }
 0x769   : > { %v3414_v0 = vpop.eup %3413  ;;  %3431 = vrcp.f32 %v2417_v59  ;;  %v2419_v1 = vadd.f32 1.0, %v3412_v61  ;;  %v2381_v7 = vmul.f32 1.442695, %v2307_v60 }
 0x76a   : > { %v3416_v2 = vpop.eup %3415  ;;  %3433 = vrcp.f32 %v2418_v62  ;;  %v2420_v3 = vadd.f32 1.0, %v3414_v0  ;;  %v2264_v5 = vpop.f32.mrb[84].mxu1  ;;  %v2383_v11 = vmul.f32 1.442695, %v2308_v63 }
 0x76b   : > { %v3418_v6 = vpop.eup %3417  ;;  %2493 = vst [vmem:[%s4462_s25 + $0xa0] sm:$0xff] %v3416_v2  ;;  %3435 = vrcp.f32 %v2419_v1  ;;  %v2265_v8 = vadd.f32 %v2264_v5, %v4439_v35  ;;  %v2266_v9 = vpop.f32.mrb[85].mxu1 }
 0x76c   : > { %v3420_v10 = vpop.eup %3419  ;;  %2494 = vst [vmem:[%s4462_s25 + $0xa8] sm:$0xff] %v3418_v6  ;;  %3437 = vrcp.f32 %v2420_v3  ;;  %v2267_v13 = vadd.f32 %v2266_v9, %v4441_v12  ;;  %v2268_v14 = vpop.f32.mrb[86].mxu1 }
 0x76d   : > { %v3422_v15 = vpop.eup %3421  ;;  %2495 = vst [vmem:[%s4462_s25 + $0xb0] sm:$0xff] %v3420_v10  ;;  %3439 = vpow2.f32 %v2377_v54  ;;  %v2309_v16 = vsub.f32 0.0, %v2265_v8  ;;  %v2269_v17 = vadd.f32 %v2268_v14, %v4439_v35  ;;  %v2270_v18 = vpop.f32.mrb[87].mxu1 }
 0x76e   : > { %v3424_v19 = vpop.eup %3423  ;;  %2496 = vst [vmem:[%s4462_s25 + $0xb8] sm:$0xff] %v3422_v15  ;;  %3441 = vpow2.f32 %v2379_v4  ;;  %v2310_v20 = vsub.f32 0.0, %v2267_v13  ;;  %v2271_v21 = vadd.f32 %v2270_v18, %v4441_v12 }
 0x76f   : > { %v3426_v23 = vpop.eup %3425  ;;  %v2421_v24 = vadd.f32 1.0, %v3424_v19  ;;  %3443 = vpow2.f32 %v2381_v7  ;;  %v2311_v25 = vsub.f32 0.0, %v2269_v17  ;;  %v2385_v29 = vmul.f32 1.442695, %v2309_v16 }
 0x770   : > { %v3428_v26 = vpop.eup %3427  ;;  %v2422_v27 = vadd.f32 1.0, %v3426_v23  ;;  %3445 = vpow2.f32 %v2383_v11  ;;  %v2312_v28 = vsub.f32 0.0, %v2271_v21  ;;  %v2387_v31 = vmul.f32 1.442695, %v2310_v20 }
 0x771   : > { %v3430_v44 = vpop.eup %3429  ;;  %3447 = vrcp.f32 %v2421_v24  ;;  %v2423_v35 = vadd.f32 1.0, %v3428_v26  ;;  %v2389_v32 = vmul.f32 1.442695, %v2311_v25 }
 0x772   : > { %3449 = vrcp.f32 %v2422_v27  ;;  %v2424_v30 = vadd.f32 1.0, %v3430_v44  ;;  %v2391_v34 = vmul.f32 1.442695, %v2312_v28 }
 0x773   : > { %v3432_v12 = vpop.eup %3431  ;;  %3451 = vrcp.f32 %v2423_v35 }
 0x774   : > { %v3434_v46 = vpop.eup %3433  ;;  %2497 = vst [vmem:[%s4462_s25 + $0xc0] sm:$0xff] %v3432_v12  ;;  %3453 = vrcp.f32 %v2424_v30 }
 0x775   : > { %v3436_v36 = vpop.eup %3435  ;;  %2498 = vst [vmem:[%s4462_s25 + $0xc8] sm:$0xff] %v3434_v46  ;;  %3455 = vpow2.f32 %v2385_v29 }
 0x776   : > { %v3438_v37 = vpop.eup %3437  ;;  %2499 = vst [vmem:[%s4462_s25 + $0xd0] sm:$0xff] %v3436_v36  ;;  %3457 = vpow2.f32 %v2387_v31 }
 0x777   : > { %v3440_v38 = vpop.eup %3439  ;;  %2500 = vst [vmem:[%s4462_s25 + $0xd8] sm:$0xff] %v3438_v37  ;;  %3459 = vpow2.f32 %v2389_v32 }
 0x778   : > { %v3442_v39 = vpop.eup %3441  ;;  %v2425_v22 = vadd.f32 1.0, %v3440_v38  ;;  %3461 = vpow2.f32 %v2391_v34 }
 0x779   : > { %v3444_v40 = vpop.eup %3443  ;;  %v2426_v41 = vadd.f32 1.0, %v3442_v39 }
 0x77a   : > { %v3446_v42 = vpop.eup %3445  ;;  %3463 = vrcp.f32 %v2425_v22  ;;  %v2427_v43 = vadd.f32 1.0, %v3444_v40 }
 0x77b   : > { %v3448_v45 = vpop.eup %3447  ;;  %3465 = vrcp.f32 %v2426_v41  ;;  %v2428_v47 = vadd.f32 1.0, %v3446_v42 }
 0x77c   : > { %v3450_v48 = vpop.eup %3449  ;;  %2501 = vst [vmem:[%s4462_s25 + $0xe0] sm:$0xff] %v3448_v45  ;;  %3467 = vrcp.f32 %v2427_v43 }
 0x77d   : > { %v3452_v49 = vpop.eup %3451  ;;  %2502 = vst [vmem:[%s4462_s25 + $0xe8] sm:$0xff] %v3450_v48  ;;  %3469 = vrcp.f32 %v2428_v47 }
 0x77e   : > { %v3454_v50 = vpop.eup %3453  ;;  %2503 = vst [vmem:[%s4462_s25 + $0xf0] sm:$0xff] %v3452_v49 }
 0x77f   : > { %v3456_v51 = vpop.eup %3455  ;;  %2504 = vst [vmem:[%s4462_s25 + $0xf8] sm:$0xff] %v3454_v50 }
 0x780   : > { %v3458_v52 = vpop.eup %3457  ;;  %v2429_v53 = vadd.f32 1.0, %v3456_v51 }
 0x781   : > { %v3460_v33 = vpop.eup %3459  ;;  %v2430_v55 = vadd.f32 1.0, %v3458_v52 }
 0x782   : > { %v3462_v56 = vpop.eup %3461  ;;  %3471 = vrcp.f32 %v2429_v53  ;;  %v2431_v57 = vadd.f32 1.0, %v3460_v33 }
 0x783   : > { %3473 = vrcp.f32 %v2430_v55  ;;  %v2432_v58 = vadd.f32 1.0, %v3462_v56 }
 0x784   : > { %v3464_v59 = vpop.eup %3463  ;;  %3475 = vrcp.f32 %v2431_v57 }
 0x785   : > { %v3466_v60 = vpop.eup %3465  ;;  %2505 = vst [vmem:[%s4462_s25 + $0x100] sm:$0xff] %v3464_v59  ;;  %3477 = vrcp.f32 %v2432_v58 }
 0x786   : > { %v3468_v61 = vpop.eup %3467  ;;  %2506 = vst [vmem:[%s4462_s25 + $0x108] sm:$0xff] %v3466_v60 }
 0x787   : > { %v3470_v62 = vpop.eup %3469  ;;  %2507 = vst [vmem:[%s4462_s25 + $0x110] sm:$0xff] %v3468_v61 }
 0x788   : > { %2508 = vst [vmem:[%s4462_s25 + $0x118] sm:$0xff] %v3470_v62 }
 0x78a   : > { %2520 = sbr.rel (!%p4654_p2) target bundleno = 1966 (0x7ae), region = 112 }
 0x78c   : > { %v3472_v63 = vpop.eup %3471 }
 0x78d   : > { %v3474_v0 = vpop.eup %3473  ;;  %2509 = vst [vmem:[%s4462_s25 + $0x120] sm:$0xff] %v3472_v63 }
 0x78e   : > { %v3476_v1 = vpop.eup %3475  ;;  %2510 = vst [vmem:[%s4462_s25 + $0x128] sm:$0xff] %v3474_v0 }
 0x78f   : > { %v3478_v54 = vpop.eup %3477  ;;  %2511 = vst [vmem:[%s4462_s25 + $0x130] sm:$0xff] %v3476_v1 }
 0x790   : > { %2512 = vst [vmem:[%s4462_s25 + $0x138] sm:$0xff] %v3478_v54 }
 0x791   : > { %s4667_s28 = smov (!%p2523_p6, %s2522_s28), 20 }
 0x792   : > { %s4532_s27 = sshll.u32 %s4667_s28, 8 }
 0x793   : > { %s2528_s18 = ssub.s32 5120, %s4532_s27 }
 0x794   : > { %2529 = vsyncadd %s2514_s15, %s2528_s18  ;;  %p2806_p5 = scmp.ne.s32.totalorder %s4532_s27, 0  ;;  %s2820_s30 = smul.u32 5120, %s3873_s22 }
 0x795   : > { %s2535_s11 = sshll.u32 %s4462_s25, 4  ;;  %s4655_s24 = sld [smem:[#allocation32_spill]]  ;;  %s4545_s11 = int_to_ptr.vmem [resolvable:$true] %s2535_s11 }
 0x796   : > { %s3675_s9 = scalar_lea.vmem %s4545_s11, %s4532_s27  ;;  %s3769_s2 = smov [#allocation14]  }
 0x797   : > { %p3676_p12 = scmp.ne.s32.totalorder %s4545_s11, %s3675_s9  ;;  %s3679_s4 = sshll.u32 %s3769_s2, 4  ;;  %s3680_s4 = int_to_ptr.vmem [resolvable:$false] %s3679_s4 }
 0x798   : > { %s3681_s22 = scalar_lea.vmem %s3680_s4, 10240  ;;  %p3682_p7 = scmp.lt.s32.totalorder %s4545_s11, %s3680_s4 }
 0x799   : > { %p3677_p13 = pnand %p3676_p12, %p2806_p5  ;;  %p3683_p0 = scmp.lt.s32.totalorder %s3681_s22, %s3675_s9 }
 0x79b   : > { %s4543_s12 = scalar_lea.hbm %s4655_s24, %s2820_s30  ;;  %p3678_p11 = pneg %p3677_p13 }
 0x79c   : > { %p3684_p8 = por %p3683_p0, %p3682_p7 }
 0x79e   : > { %p3685_p9 = pnand %p3684_p8, %p3678_p11 }
 0x7a0   : > { %3688 = shalt.err (!%p3685_p9)
}
 0x7a1   : > { %s3689_s23 = scalar_lea.hbm %s4543_s12, %s4532_s27  ;;  %s3693_s26 = scalar_lea.hbm %s4655_s24, 9728 }
 0x7a2   : > { %p3690_p10 = scmp.ne.s32.totalorder %s4543_s12, %s3689_s23  ;;  %p3694_p2 = scmp.lt.u32.totalorder %s4543_s12, %s4655_s24 }
 0x7a3   : > { %p3695_p6 = scmp.lt.u32.totalorder %s3693_s26, %s3689_s23  ;;  %p3697_p13 = scmp.lt.u32.totalorder %s3689_s23, %s4543_s12 }
 0x7a4   : > { %p3691_p1 = pnand %p3690_p10, %p2806_p5 }
 0x7a5   : > { %p3696_p12 = por %p3695_p6, %p3694_p2 }
 0x7a6   : > { %p3692_p3 = pneg %p3691_p1 }
 0x7a7   : > { %p3698_p11 = por %p3697_p13, %p3696_p12 }
 0x7a9   : > { %p3699_p7 = pnand %p3698_p11, %p3692_p3 }
 0x7ab   : > { %3702 = shalt.err (!%p3699_p7)
}
 0x7ac   : > { %s3770_s30 = smov 256   ;;  %s3771_s29 = smov 16  }
 0x7ad   : > { %2541 = dma.vmem_to_hbm [thread:$0]  (%p2806_p5), %s4545_s11, %s4532_s27, %s4543_s12, %s2514_s15, %s3770_s30, %s3770_s30, %s3771_s29  }
 0x7ae PF: > { %s4656_s17 = sld [smem:[#allocation20_spill]]  ;;  %s4657_s9 = sld [smem:[#allocation24_spill]] }
 0x7b4   : > { %s2550_s2 = sand.u32 1, %s4656_s17   ;;  %p4658_p0 = scmp.ne.s32.totalorder %s4657_s9, 0 }
 0x7b5   : > { %s2551_s4 = scalar_lea.sflag [#allocation4], %s2550_s2 }
 0x7b6   : > { %p3168_p8 = pnand %p2673_p4, %p4658_p0 }
 0x7b8   : > { %3736 = dma.done.wait (!%p3168_p8), %s2551_s4, 5120  }
 0x7b9   : > { %3738 = vsyncadd (!%p3168_p8), %s2551_s4, 4294962176  ;;  %s4659_s21 = sld [smem:[#allocation21_spill]]  ;;  %s4660_s22 = sld [smem:[#allocation22_spill]] }
 0x7ba   : > { %s4661_s18 = smov %s3745_s19  ;;  %s4662_s19 = smov %s3749_s20 }
 0x7bf   : > { %p31_p9 = scmp.ge.s32.totalorder %s4659_s21, 4   ;;  %s4663_s20 = smov %s4660_s22 }
 0x7c1   :  { %33 = sbr.rel (!%p31_p9) target bundleno = 17 (0x11), region = 149 }
 0x7c8   :  { %2556 = vsyncpa [#allocation3], 1 }
 0x7c9   :  { %2558 = vsyncpa [#allocation3 + $0x1], 1 }
 0x7ca   :  { %2559 = vsyncpa [#allocation6], 1 }
 0x7cb   :  { %2560 = vsyncpa [#allocation9], 1 }
 0x7cc   :  { %2561 = vsyncpa [#allocation12], 1 }
 0x7cd   :  { %2562 = vsyncpa [#allocation4], 1 }
 0x7ce   :  { %2564 = vsyncpa [#allocation4 + $0x1], 1 }

</bundles_post_ra>
